<compile_context>
chip_gen: v6e
topology: v6e:2x2x1
jax: 0.10.0
libtpu: 0.0.40
codegen_flags: <defaults>
</compile_context>

<pallas_src>
import jax
import jax.numpy as jnp
from jax import lax
from jax.experimental import pallas as pl
from jax.experimental.pallas import tpu as pltpu

N_COMPONENTS = 6
HIDDEN = 512
OUT = 10
OUT_PAD = 128            # lane-dense output width; sliced back to OUT outside


# ---------------------------------------------------------------------------
# Helpers
# ---------------------------------------------------------------------------
def _round_up(x, m):
    return ((x + m - 1) // m) * m


def _vmem_limit_bytes():
    """Per-generation scoped-VMEM budget: ~3/4 of physical, capped at 96 MiB."""
    cap = 64 * 1024 * 1024
    try:
        info = pltpu.get_tpu_info()
        cap = int(getattr(info, "vmem_capacity_bytes", cap))
    except Exception:
        pass                      # no TPU info -> conservative default
    return int(min((cap * 3) // 4, 96 * 1024 * 1024))


def _pick_tile_and_pad(size, want, unit):
    """Tile (multiple of `unit`, <= want) plus the padded size it divides."""
    padded = _round_up(size, unit)
    t = max(unit, (min(want, padded) // unit) * unit)
    cand, best = t, unit
    while cand >= unit:
        if padded % cand == 0:
            best = cand
            break
        cand -= unit
    if best * 2 >= t:             # good divisor exists -> no extra padding
        return best, padded
    return t, _round_up(padded, t)  # otherwise pad up instead of shrinking tile


def _pick_divisor_tile(size, want, unit):
    """Largest multiple of `unit` <= want dividing `size` (size % unit == 0)."""
    t = max(unit, (min(want, size) // unit) * unit)
    while size % t:
        t -= unit
    return t


# ---------------------------------------------------------------------------
# Kernel 1: upper-triangle tiled raw Gram  X^T X  + fused column sums.
# grid = (n_pairs, n_batch_tiles); batch (reduction) axis last.
# ---------------------------------------------------------------------------
def _gram_sym_kernel(ii_ref, jj_ref, xi_ref, xj_ref, gram_ref, colsum_ref):
    p = pl.program_id(0)          # upper-triangle pair index
    k = pl.program_id(1)          # batch tile (reduction) index
    i = ii_ref[p]
    j = jj_ref[p]

    # colsum block is resident across the whole grid: zero it once.
    @pl.when(jnp.logical_and(p == 0, k == 0))
    def _():
        colsum_ref[...] = jnp.zeros_like(colsum_ref)

    # gram block (i, j) is resident across the k axis for this pair.
    @pl.when(k == 0)
    def _():
        gram_ref[...] = jnp.zeros_like(gram_ref)

    xi = xi_ref[...]
    xj = xj_ref[...]
    # Raw (uncentered) Gram contribution Xi^T @ Xj with explicit true-f32 MXU
    # accumulation (result feeds eigh).
    # TODO(synk): on v5e, check the bundle for a vxpose feeding this matmul
    # (LHS contracted on dim 0) and restructure if it lands on the crit path.
    gram_ref[...] += lax.dot_general(
        xi, xj,
        dimension_numbers=(((0,), (0,)), ((), ())),
        preferred_element_type=jnp.float32,
        precision=lax.Precision.HIGHEST,
    )

    # Column sums, accumulated exactly once per column stripe (diagonal pairs).
    @pl.when(i == j)
    def _():
        colsum_ref[pl.ds(i, 1), :] += jnp.sum(xi, axis=0, keepdims=True)


def _gram_and_colsum(xp, *, tile_n, tile_d, vmem_limit):
    n_pad, d_pad = xp.shape
    nd = d_pad // tile_d
    nn = n_pad // tile_n
    pair_i, pair_j = [], []
    for a in range(nd):
        for b in range(a, nd):
            pair_i.append(a)
            pair_j.append(b)
    ii = jnp.asarray(pair_i, dtype=jnp.int32)
    jj = jnp.asarray(pair_j, dtype=jnp.int32)

    gram_ut, colsum = pl.pallas_call(
        _gram_sym_kernel,
        out_shape=(
            jax.ShapeDtypeStruct((d_pad, d_pad), jnp.float32),
            jax.ShapeDtypeStruct((nd, tile_d), jnp.float32),
        ),
        grid_spec=pltpu.PrefetchScalarGridSpec(
            num_scalar_prefetch=2,
            grid=(len(pair_i), nn),
            in_specs=[
                pl.BlockSpec((tile_n, tile_d), lambda p, k, ii, jj: (k, ii[p])),
                pl.BlockSpec((tile_n, tile_d), lambda p, k, ii, jj: (k, jj[p])),
            ],
            out_specs=(
                pl.BlockSpec((tile_d, tile_d),
                             lambda p, k, ii, jj: (ii[p], jj[p])),
                pl.BlockSpec((nd, tile_d), lambda p, k, ii, jj: (0, 0)),
            ),
        ),
        compiler_params=pltpu.CompilerParams(
            dimension_semantics=("arbitrary", "arbitrary"),
            vmem_limit_bytes=vmem_limit),
    )(ii, jj, xp, xp)
    return gram_ut, colsum.reshape(1, d_pad)


# ---------------------------------------------------------------------------
# Kernel 2: fused centering + folded PCA/Linear + ReLU + lane-padded Linear,
# K-tiled over D with a resident f32 accumulator.
# ---------------------------------------------------------------------------
def _fused_pca_mlp_kernel(x_ref, mean_ref, w1_ref, b1_ref, w2_ref, b2_ref,
                          o_ref, acc_ref):
    k = pl.program_id(1)

    @pl.when(k == 0)
    def _():
        acc_ref[...] = jnp.zeros_like(acc_ref)

    # Centering recomputed on the fly (hidden under the MXU matmul);
    # bf16 operands, f32 accumulation.
    xc = (x_ref[...] - mean_ref[...]).astype(jnp.bfloat16)
    acc_ref[...] += jnp.dot(xc, w1_ref[...], preferred_element_type=jnp.float32)

    @pl.when(k == pl.num_programs(1) - 1)
    def _():
        h = jnp.maximum(acc_ref[...] + b1_ref[...], 0.0)
        # TODO(synk): nn.Dropout(0.2) is identity in eval mode; no RNG here.
        o_ref[...] = (
            jnp.dot(h.astype(jnp.bfloat16), w2_ref[...],
                    preferred_element_type=jnp.float32)
            + b2_ref[...]
        )


def _fused_mlp(xp, mean_pad, w1f, b1, w2p, b2p, *, tile_n, tile_k, vmem_limit):
    n_pad, d_pad = xp.shape
    return pl.pallas_call(
        _fused_pca_mlp_kernel,
        out_shape=jax.ShapeDtypeStruct((n_pad, OUT_PAD), jnp.float32),
        grid_spec=pltpu.PrefetchScalarGridSpec(
            num_scalar_prefetch=0,
            grid=(n_pad // tile_n, d_pad // tile_k),
            in_specs=[
                pl.BlockSpec((tile_n, tile_k), lambda i, k: (i, k)),
                pl.BlockSpec((1, tile_k), lambda i, k: (0, k)),
                pl.BlockSpec((tile_k, HIDDEN), lambda i, k: (k, 0)),
                pl.BlockSpec((1, HIDDEN), lambda i, k: (0, 0)),
                pl.BlockSpec((HIDDEN, OUT_PAD), lambda i, k: (0, 0)),
                pl.BlockSpec((1, OUT_PAD), lambda i, k: (0, 0)),
            ],
            out_specs=pl.BlockSpec((tile_n, OUT_PAD), lambda i, k: (i, 0)),
            scratch_shapes=[pltpu.VMEM((tile_n, HIDDEN), jnp.float32)],
        ),
        compiler_params=pltpu.CompilerParams(
            dimension_semantics=("parallel", "arbitrary"),
            vmem_limit_bytes=vmem_limit),
    )(xp, mean_pad, w1f, b1, w2p, b2p)


# ---------------------------------------------------------------------------
# PCA fit (plain JAX) + parameters
# ---------------------------------------------------------------------------
def _pca_components(gram):
    # TODO(synk): symmetric eigendecomposition has no Pallas equivalent; XLA.
    _, evecs = jnp.linalg.eigh(gram)             # ascending eigenvalues
    comps = evecs[:, -N_COMPONENTS:][:, ::-1]    # top-6 components, (D, 6)
    # sklearn-style sign convention: largest-|.| entry of each component > 0.
    max_idx = jnp.argmax(jnp.abs(comps), axis=0)
    signs = jnp.sign(comps[max_idx, jnp.arange(N_COMPONENTS)])
    signs = jnp.where(signs == 0, 1.0, signs)
    return comps * signs


def init_params(key):
    """PyTorch-Linear-shaped params: fc.0 Linear(6,512), fc.3 Linear(512,10)."""
    k1, k2, k3, k4 = jax.random.split(key, 4)
    bound1 = 1.0 / jnp.sqrt(jnp.float32(N_COMPONENTS))
    bound2 = 1.0 / jnp.sqrt(jnp.float32(HIDDEN))
    w1 = jax.random.uniform(k1, (N_COMPONENTS, HIDDEN), jnp.float32, -bound1, bound1)
    b1 = jax.random.uniform(k2, (1, HIDDEN), jnp.float32, -bound1, bound1)
    w2 = jax.random.uniform(k3, (HIDDEN, OUT), jnp.float32, -bound2, bound2)
    b2 = jax.random.uniform(k4, (1, OUT), jnp.float32, -bound2, bound2)
    return w1, b1, w2, b2


# ---------------------------------------------------------------------------
# Full forward
# ---------------------------------------------------------------------------
def pca_model_forward(x, params, *, gram_tile_d=None, gram_tile_n=None,
                      mlp_tile_n=None, mlp_tile_k=None):
    w1, b1, w2, b2 = params
    n = x.shape[0]
    xf = x.reshape(n, -1).astype(jnp.float32)
    d = xf.shape[1]

    vmem_limit = _vmem_limit_bytes()
    if gram_tile_d is None:
        # Bigger D tiles where VMEM allows (128-MiB chips); 512 on v7x (64 MiB).
        gram_tile_d = 1024 if vmem_limit >= (64 << 20) else 512
    if gram_tile_n is None:
        gram_tile_n = 512

    tile_d, d_pad = _pick_tile_and_pad(d, gram_tile_d, 128)
    tile_n, n_pad = _pick_tile_and_pad(n, gram_tile_n, 8)

    # Zero-padding: zero rows/cols contribute nothing to column sums or the
    # raw Gram, so results are unchanged after slicing back.
    xp = jnp.pad(xf, ((0, n_pad - n), (0, d_pad - d)))

    # --- kernel 1: upper-triangle tiled raw Gram + fused column sums ---
    gram_ut, colsum = _gram_and_colsum(xp, tile_n=tile_n, tile_d=tile_d,
                                       vmem_limit=vmem_limit)

    # --- plain JAX: mirror, rank-1 mean correction, eigh, basis folding ---
    mean_pad = colsum / jnp.float32(n)            # (1, d_pad); padded cols = 0
    g = gram_ut[:d, :d]
    g = jnp.triu(g) + jnp.triu(g, 1).T            # lower-tri blocks unwritten
    mean_d = mean_pad[:, :d]
    gram_c = g - (jnp.float32(n) * mean_d.T) * mean_d   # Xc^T Xc (rank-1 corr.)
    comps = _pca_components(gram_c)               # (d, 6)

    w1_folded = jnp.dot(comps, w1, precision=lax.Precision.HIGHEST)  # (d, 512)
    w1_folded = jnp.zeros((d_pad, HIDDEN), jnp.float32).at[:d].set(w1_folded)
    w2_pad = jnp.zeros((HIDDEN, OUT_PAD), jnp.float32).at[:, :OUT].set(w2)
    b2_pad = jnp.zeros((1, OUT_PAD), jnp.float32).at[:, :OUT].set(b2)

    # --- kernel 2: fused centering + folded Linear + ReLU + padded Linear ---
    tk = _pick_divisor_tile(d_pad, 512 if mlp_tile_k is None else mlp_tile_k, 128)
    want_tn = 256 if mlp_tile_n is None else mlp_tile_n
    if n_pad >= 16:
        want_tn = min(want_tn, n_pad // 2)   # >= 2 batch steps (v7x megacore)
    tn = _pick_divisor_tile(n_pad, want_tn, 8)

    out = _fused_mlp(xp, mean_pad, w1_folded.astype(jnp.bfloat16), b1,
                     w2_pad.astype(jnp.bfloat16), b2_pad,
                     tile_n=tn, tile_k=tk, vmem_limit=vmem_limit)
    return out[:n, :OUT]


# ---------------------------------------------------------------------------
# Self-test
# ---------------------------------------------------------------------------
if __name__ == "__main__":
    key = jax.random.PRNGKey(0)
    kx, kp, kx2 = jax.random.split(key, 3)
    params = init_params(kp)

    def reference(x, params):
        w1, b1, w2, b2 = params
        with jax.default_matmul_precision("highest"):
            xf = x.reshape(x.shape[0], -1).astype(jnp.float32)
            xc = xf - jnp.mean(xf, axis=0, keepdims=True)
            comps = _pca_components(xc.T @ xc)
            z = xc @ comps
            h = jnp.maximum(z @ w1 + b1, 0.0)
            return h @ w2 + b2

    # Case 1: NCHW input (batch >= 6 so PCA(n_components=6) is well-defined),
    # default tiling (single pair / single K step at this size).
    x = jax.random.normal(kx, (16, 4, 8, 8), dtype=jnp.float32)
    out = jax.block_until_ready(pca_model_forward(x, params))
    assert out.shape == (16, OUT) and out.dtype == jnp.float32
    ref = jax.block_until_ready(reference(x, params))
    scale = float(jnp.max(jnp.abs(ref))) + 1e-6
    err = float(jnp.max(jnp.abs(out - ref))) / scale
    assert err < 5e-2, f"default-path mismatch: rel err {err}"

    # Case 2: same input, forced small tiles — exercises the multi-pair
    # upper-triangle grid, batch-axis accumulation and the MLP K reduction.
    out_t = jax.block_until_ready(
        pca_model_forward(x, params, gram_tile_d=128, gram_tile_n=8,
                          mlp_tile_n=8, mlp_tile_k=128))
    err_t = float(jnp.max(jnp.abs(out_t - ref))) / scale
    assert err_t < 5e-2, f"tiled-path mismatch: rel err {err_t}"

    # Case 3: shapes that need padding (D = 3*7*9 = 189 -> 256, N = 10 -> 16).
    x2 = jax.random.normal(kx2, (10, 3, 7, 9), dtype=jnp.float32)
    out2 = jax.block_until_ready(
        pca_model_forward(x2, params, gram_tile_d=128, gram_tile_n=8))
    ref2 = jax.block_until_ready(reference(x2, params))
    scale2 = float(jnp.max(jnp.abs(ref2))) + 1e-6
    err2 = float(jnp.max(jnp.abs(out2 - ref2))) / scale2
    assert err2 < 5e-2, f"padded-path mismatch: rel err {err2}"

    print("KERNEL_OK")
</pallas_src>

<mosaic_0001>
module attributes {stable_mosaic.version = 11 : i64} {
  func.func @_gram_sym_kernel(%arg0: i32, %arg1: i32, %arg2: memref<1xi32, #tpu.memory_space<smem>>, %arg3: memref<1xi32, #tpu.memory_space<smem>>, %arg4: memref<16x256xf32, #tpu.memory_space<vmem>>, %arg5: memref<16x256xf32, #tpu.memory_space<vmem>>, %arg6: memref<256x256xf32, #tpu.memory_space<vmem>>, %arg7: memref<1x256xf32, #tpu.memory_space<vmem>>) attributes {dimension_semantics = [#tpu.dimension_semantics<arbitrary>, #tpu.dimension_semantics<arbitrary>], iteration_bounds = array<i64: 1, 1>, scalar_prefetch = 2 : i64, scratch_operands = 0 : i64, tpu.core_type = #tpu.core_type<tc>, window_params = [{transform_indices = @transform_0, window_bounds = array<i64: 16, 256>}, {transform_indices = @transform_1, window_bounds = array<i64: 16, 256>}, {transform_indices = @transform_2, window_bounds = array<i64: 256, 256>}, {pipeline_mode = #tpu.pipeline_mode<synchronous>, transform_indices = @transform_3, window_bounds = array<i64: 1, 256>}]} {
    %0 = arith.index_cast %arg0 : i32 to index
    %1 = memref.load %arg2[%0] : memref<1xi32, #tpu.memory_space<smem>>
    %2 = arith.index_cast %arg0 : i32 to index
    %3 = memref.load %arg3[%2] : memref<1xi32, #tpu.memory_space<smem>>
    %c0_i32 = arith.constant 0 : i32
    %4 = arith.cmpi eq, %arg0, %c0_i32 : i32
    %c0_i32_0 = arith.constant 0 : i32
    %5 = arith.cmpi eq, %arg1, %c0_i32_0 : i32
    %6 = arith.andi %4, %5 : i1
    %7 = arith.extui %6 : i1 to i32
    %c0_i32_1 = arith.constant 0 : i32
    %8 = arith.cmpi ne, %7, %c0_i32_1 : i32
    scf.if %8 {
      %cst_12 = arith.constant 0.000000e+00 : f32
      %21 = vector.broadcast %cst_12 : f32 to vector<1x256xf32>
      %c0_13 = arith.constant 0 : index
      %c0_14 = arith.constant 0 : index
      %22 = vector.load %arg7[%c0_13, %c0_14] : memref<1x256xf32, #tpu.memory_space<vmem>>, vector<1x256xf32>
      tpu.vector_store %arg7[%c0_13, %c0_14], %21 {strides = array<i32>} : memref<1x256xf32, #tpu.memory_space<vmem>>, vector<1x256xf32>,
    } else {
    }
    %c0_i32_2 = arith.constant 0 : i32
    %9 = arith.cmpi eq, %arg1, %c0_i32_2 : i32
    %10 = arith.extui %9 : i1 to i32
    %c0_i32_3 = arith.constant 0 : i32
    %11 = arith.cmpi ne, %10, %c0_i32_3 : i32
    scf.if %11 {
      %cst_12 = arith.constant 0.000000e+00 : f32
      %21 = vector.broadcast %cst_12 : f32 to vector<256x256xf32>
      %c0_13 = arith.constant 0 : index
      %c0_14 = arith.constant 0 : index
      %22 = vector.load %arg6[%c0_13, %c0_14] : memref<256x256xf32, #tpu.memory_space<vmem>>, vector<256x256xf32>
      tpu.vector_store %arg6[%c0_13, %c0_14], %21 {strides = array<i32>} : memref<256x256xf32, #tpu.memory_space<vmem>>, vector<256x256xf32>,
    } else {
    }
    %c0 = arith.constant 0 : index
    %c0_4 = arith.constant 0 : index
    %12 = vector.load %arg4[%c0, %c0_4] : memref<16x256xf32, #tpu.memory_space<vmem>>, vector<16x256xf32>
    %c0_5 = arith.constant 0 : index
    %c0_6 = arith.constant 0 : index
    %13 = vector.load %arg5[%c0_5, %c0_6] : memref<16x256xf32, #tpu.memory_space<vmem>>, vector<16x256xf32>
    %c0_7 = arith.constant 0 : index
    %c0_8 = arith.constant 0 : index
    %14 = vector.load %arg6[%c0_7, %c0_8] : memref<256x256xf32, #tpu.memory_space<vmem>>, vector<256x256xf32>
    %cst = arith.constant dense<0.000000e+00> : vector<256x256xf32>
    %15 = tpu.matmul %12, %13, %cst {dimension_numbers = #tpu.dot_dimension_numbers<[0], [0], [1], [1], [0, 1, 1, 1], [], []>, precision = #tpu.contract_precision<fp32>} : vector<16x256xf32>, vector<16x256xf32>, vector<256x256xf32> -> vector<256x256xf32>
    %16 = arith.addf %14, %15 : vector<256x256xf32>
    %c0_9 = arith.constant 0 : index
    %c0_10 = arith.constant 0 : index
    %17 = vector.load %arg6[%c0_9, %c0_10] : memref<256x256xf32, #tpu.memory_space<vmem>>, vector<256x256xf32>
    tpu.vector_store %arg6[%c0_9, %c0_10], %16 {strides = array<i32>} : memref<256x256xf32, #tpu.memory_space<vmem>>, vector<256x256xf32>,
    %18 = arith.cmpi eq, %1, %3 : i32
    %19 = arith.extui %18 : i1 to i32
    %c0_i32_11 = arith.constant 0 : i32
    %20 = arith.cmpi ne, %19, %c0_i32_11 : i32
    scf.if %20 {
      %21 = arith.index_cast %1 : i32 to index
      %c0_12 = arith.constant 0 : index
      %22 = vector.load %arg7[%21, %c0_12] : memref<1x256xf32, #tpu.memory_space<vmem>>, vector<1x256xf32>
      %cst_13 = arith.constant dense<0.000000e+00> : vector<256xf32>
      %23 = vector.multi_reduction <add>, %12, %cst_13 [0] : vector<16x256xf32> to vector<256xf32>
      %24 = vector.shape_cast %23 : vector<256xf32> to vector<1x256xf32>
      %25 = arith.addf %22, %24 : vector<1x256xf32>
      %26 = arith.index_cast %1 : i32 to index
      %c0_14 = arith.constant 0 : index
      %27 = vector.load %arg7[%26, %c0_14] : memref<1x256xf32, #tpu.memory_space<vmem>>, vector<1x256xf32>
      tpu.vector_store %arg7[%26, %c0_14], %25 {strides = array<i32>} : memref<1x256xf32, #tpu.memory_space<vmem>>, vector<1x256xf32>,
    } else {
    }
    return
  }
  func.func @transform_0(%arg0: i32, %arg1: i32, %arg2: memref<1xi32, #tpu.memory_space<smem>>, %arg3: memref<1xi32, #tpu.memory_space<smem>>) -> (i32, i32) {
    %0 = arith.index_cast %arg0 : i32 to index
    %1 = memref.load %arg2[%0] : memref<1xi32, #tpu.memory_space<smem>>
    %c0_i32 = arith.constant 0 : i32
    return %arg1, %1 : i32, i32
  }
  func.func @transform_1(%arg0: i32, %arg1: i32, %arg2: memref<1xi32, #tpu.memory_space<smem>>, %arg3: memref<1xi32, #tpu.memory_space<smem>>) -> (i32, i32) {
    %0 = arith.index_cast %arg0 : i32 to index
    %1 = memref.load %arg3[%0] : memref<1xi32, #tpu.memory_space<smem>>
    %c0_i32 = arith.constant 0 : i32
    return %arg1, %1 : i32, i32
  }
  func.func @transform_2(%arg0: i32, %arg1: i32, %arg2: memref<1xi32, #tpu.memory_space<smem>>, %arg3: memref<1xi32, #tpu.memory_space<smem>>) -> (i32, i32) {
    %0 = arith.index_cast %arg0 : i32 to index
    %1 = memref.load %arg2[%0] : memref<1xi32, #tpu.memory_space<smem>>
    %2 = arith.index_cast %arg0 : i32 to index
    %3 = memref.load %arg3[%2] : memref<1xi32, #tpu.memory_space<smem>>
    %c0_i32 = arith.constant 0 : i32
    return %1, %3 : i32, i32
  }
  func.func @transform_3(%arg0: i32, %arg1: i32, %arg2: memref<1xi32, #tpu.memory_space<smem>>, %arg3: memref<1xi32, #tpu.memory_space<smem>>) -> (i32, i32) {
    %c0_i32 = arith.constant 0 : i32
    %c0_i32_0 = arith.constant 0 : i32
    %c0_i32_1 = arith.constant 0 : i32
    return %c0_i32, %c0_i32_0 : i32, i32
  }
}

</mosaic_0001>

<bundles_post_ra>
// kernel: tpu_custom_call.1
= control target key start
LH: loop header
LB: loop body
LE: loop exit
PB: predicated region body
PF: predicated region fallthrough
CT: control target
= control target key end

     0   :  { %s4009_s0 = inlined_call_operand.<no memory space> [shape: s32[1], index: 0, kind: input, shape index: {}]   ;;  %s4010_s1 = inlined_call_operand.<no memory space> [shape: s32[1], index: 1, kind: input, shape index: {}]   ;;  %s4011_s2 = inlined_call_operand.hbm [shape: f32[16,256], index: 2, kind: input, shape index: {}]   ;;  %s4012_s3 = inlined_call_operand.hbm [shape: f32[16,256], index: 3, kind: input, shape index: {}]   ;;  %s4013_s4 = inlined_call_operand.hbm [shape: f32[256,256], index: 4, kind: output, shape index: {0}]   ;;  %s4014_s5 = inlined_call_operand.hbm [shape: f32[1,256], index: 5, kind: output, shape index: {1}]  }
   0x1   :  { %11 = sst [smem:[#allocation3]] %s4009_s0 }
   0x2   :  { %12 = sst [smem:[#allocation4]] %s4010_s1 }
   0x3   :  { %13 = vsyncpa [#allocation6], 0 }
   0x4   :  { %14 = vsyncpa [#allocation9], 0 }
   0x5   :  { %15 = vsyncpa [#allocation7], 0 }
   0x6   :  { %16 = vsyncpa [#allocation12], 0  ;;  %s19_s22 = sld [smem:[#allocation3]]  ;;  %s2725_s23 = smov [#allocation5]  }
   0x7   :  { %s26_s24 = sshll.u32 %s2725_s23, 4  ;;  %s35_s25 = sld [smem:[#allocation4]]  ;;  %s27_s24 = int_to_ptr.vmem [resolvable:$true] %s26_s24 }
   0x8   :  { %s2726_s26 = smov [#allocation8]   ;;  %s2633_s8 = scalar_lea.hbm %s4011_s2, 512 }
   0x9   :  { %s42_s27 = sshll.u32 %s2726_s26, 4  ;;  %s2772_s27 = int_to_ptr.vmem [resolvable:$true] %s42_s27 }
   0xc   :  { %s2620_s28 = sshll.u32 %s19_s22, 8 }
   0xd   :  { %s25_s0 = scalar_lea.hbm %s4011_s2, %s2620_s28 }
   0xe   :  { %s2631_s6 = scalar_lea.hbm %s25_s0, 512  ;;  %p2634_p1 = scmp.lt.s32.totalorder %s25_s0, %s4011_s2 }
   0xf   :  { %p2632_p0 = scmp.ne.s32.totalorder %s25_s0, %s2631_s6  ;;  %p2635_p2 = scmp.lt.s32.totalorder %s2633_s8, %s2631_s6 }
  0x11   :  { %p2636_p3 = por %p2635_p2, %p2634_p1 }
  0x13   :  { %p2637_p4 = pnand %p2636_p3, %p2632_p0 }
  0x15   :  { %2640 = shalt.err (!%p2637_p4)
}
  0x16   :  { %s2641_s11 = scalar_lea.vmem %s27_s24, 512  ;;  %p2646_p6 = scmp.lt.s32.totalorder %s27_s24, %s27_s24 }
  0x17   :  { %p2642_p5 = scmp.ne.s32.totalorder %s27_s24, %s2641_s11  ;;  %p2647_p7 = scmp.lt.s32.totalorder %s2641_s11, %s2641_s11 }
  0x19   :  { %p2648_p8 = por %p2647_p7, %p2646_p6 }
  0x1b   :  { %p2649_p9 = pnand %p2648_p8, %p2642_p5 }
  0x1d   :  { %2652 = shalt.err (!%p2649_p9)
}
  0x1e   :  { %s2727_s12 = smov 256   ;;  %s2728_s13 = smov 16  }
  0x1f   :  { %32 = dma.hbm_to_vmem [thread:$0]  %s25_s0, 512, %s27_s24, [#allocation6], %s2727_s12, %s2727_s12, %s2728_s13  }
  0x20   :  { %s2621_s14 = sshll.u32 %s35_s25, 8  ;;  %s2655_s20 = scalar_lea.hbm %s4012_s3, 512 }
  0x21   :  { %s41_s16 = scalar_lea.hbm %s4012_s3, %s2621_s14 }
  0x22   :  { %s2653_s17 = scalar_lea.hbm %s41_s16, 512  ;;  %p2656_p11 = scmp.lt.s32.totalorder %s41_s16, %s4012_s3 }
  0x23   :  { %p2654_p10 = scmp.ne.s32.totalorder %s41_s16, %s2653_s17  ;;  %p2657_p12 = scmp.lt.s32.totalorder %s2655_s20, %s2653_s17 }
  0x25   :  { %p2658_p13 = por %p2657_p12, %p2656_p11 }
  0x27   :  { %p2659_p0 = pnand %p2658_p13, %p2654_p10 }
  0x29   :  { %2662 = shalt.err (!%p2659_p0)
}
  0x2a   :  { %s2663_s23 = scalar_lea.vmem %s2772_s27, 512  ;;  %p2668_p2 = scmp.lt.s32.totalorder %s2772_s27, %s2772_s27 }
  0x2b   :  { %p2664_p1 = scmp.ne.s32.totalorder %s2772_s27, %s2663_s23  ;;  %p2669_p3 = scmp.lt.s32.totalorder %s2663_s23, %s2663_s23 }
  0x2d   :  { %p2670_p4 = por %p2669_p3, %p2668_p2 }
  0x2f   :  { %p2671_p5 = pnand %p2670_p4, %p2664_p1 }
  0x31   :  { %2674 = shalt.err (!%p2671_p5)
}
  0x32   :  { %48 = dma.hbm_to_vmem [thread:$0]  %s41_s16, 512, %s2772_s27, [#allocation9], %s2727_s12, %s2727_s12, %s2728_s13  }
  0x33   :  { %2717 = dma.done.wait [#allocation6], 512  }
  0x34   :  { %2718 = vsyncadd [#allocation6], 4294966784 }
  0x35   :  { %2719 = dma.done.wait [#allocation9], 512  }
  0x36   :  { %2720 = vsyncadd [#allocation9], 4294966784  ;;  %v4015_v0 = vlaneseq  ;;  %s2800_s3 = sld [smem:[#allocation3]]  ;;  %v4042_v1 = vmov 0.0   ;;  %v4077_v2 = vmov 0  ;;  %v2814_v3 = vld [vmem:[#allocation5] sm:$0xff] }
  0x37   :  { %881 = vmatprep.mubr.f32.mxu1 %v4042_v1  ;;  %444 = vmatprep.mubr.f32.mxu0 %v4042_v1  ;;  %s2804_s24 = sld [smem:[#allocation4]]  ;;  %4080 = vst [vmem:[#allocation18_spill] sm:$0xff] %v2814_v3  ;;  %v2816_v4 = vld [vmem:[#allocation5 + $0x8] sm:$0xff]  ;;  %v2819_v5 = vld [vmem:[#allocation5 + $0x10] sm:$0xff]  ;;  %v150_v6 = vld [vmem:[#allocation8 + $0x18] sm:$0xff]  ;;  %vm279_vm1 = vcmask 130048  }
  0x38   :  { %vm2807_vm0 = vcmp.lt.s32.totalorder %v4015_v0, 256  ;;  %4081 = vst [vmem:[#allocation19_spill] sm:$0xff] %v2816_v4  ;;  %215 = vxpose.xlu0.b32.start [1/2] (short) %v2814_v3, 128  ;;  %4082 = vst [vmem:[#allocation20_spill] sm:$0xff] %v2819_v5  ;;  %247 = vxpose.xlu1.b32.start [1/2] (short) %v2816_v4, 128  ;;  %v149_v7 = vld [vmem:[#allocation8 + $0x10] sm:$0xff]  ;;  %v2822_v8 = vld [vmem:[#allocation5 + $0x18] sm:$0xff]  ;;  %v404_v9 = vand.u32 4294901760, %v150_v6 }
  0x39   :  { %v4078_v2 = vsel %vm2807_vm0, 4294967295, %v4077_v2  ;;  %75 = vst.msk [vmem:[#allocation11] sm:$0x3] %vm2807_vm0, %v4042_v1  ;;  %4083 = vst [vmem:[#allocation21_spill] sm:$0xff] %v2822_v8  ;;  %v2824_v10 = vand.u32 4294901760, %v149_v7  ;;  %v148_v11 = vld [vmem:[#allocation8 + $0x8] sm:$0xff] }
  0x3a   :  { %4079 = vst [vmem:[#allocation17_spill] sm:$0xff] %v4078_v2  ;;  %v147_v12 = vld [vmem:[#allocation8] sm:$0xff]  ;;  %v2826_v13 = vand.u32 4294901760, %v148_v11  ;;  %v2830_v15 = vsub.f32 %v150_v6, %v404_v9  ;;  %405 = vmatprep.subr.mxu0 %v404_v9 }
  0x3b   :  { %v2828_v14 = vand.u32 4294901760, %v147_v12  ;;  %v2833_v16 = vsub.f32 %v149_v7, %v2824_v10  ;;  %407 = vmatpush1.msra.mxu0 %v2824_v10 }
  0x3c   :  { %216 = vxpose.xlu0.b32.end [2/2] (short) %v2819_v5, 128  ;;  %248 = vxpose.xlu1.b32.end [2/2] (short) %v2822_v8, 128  ;;  %v2838_v17 = vsub.f32 %v148_v11, %v2826_v13  ;;  %v827_v19 = vand.u32 4294901760, %v2830_v15 }
  0x3d   :  { %v2841_v18 = vsub.f32 %v147_v12, %v2828_v14  ;;  %v4029_v20 = vand.u32 4294901760, %v2833_v16  ;;  %409 = vmatprep.subr.mxu0 %v2826_v13  ;;  %p2614_p6 = scmp.ne.s32.totalorder %s2800_s3, %s2804_s24 }
  0x3e   :  { %v4027_v21 = vand.u32 4294901760, %v2838_v17  ;;  %v828_v23 = vsub.f32 %v2830_v15, %v827_v19  ;;  %411 = vmatpush1.msra.mxu0 %v2828_v14  ;;  %s2615_s25 = sshll.u32 (!%p2614_p6), %s2800_s3, 1 }
  0x3f   :  { %v4026_v22 = vand.u32 4294901760, %v2841_v18  ;;  %v834_v24 = vsub.f32 %v2833_v16, %v4029_v20  ;;  %1136 = vmatprep.subr.mxu0 %v2830_v15  ;;  %s2519_s26 = scalar_lea.vmem (!%p2614_p6), [#allocation11], %s2615_s25 }
  0x40   :  { %v840_v25 = vsub.f32 %v2838_v17, %v4027_v21  ;;  %v829_v27 = vand.u32 4294901760, %v828_v23 }
  0x41   :  { %v846_v26 = vsub.f32 %v2841_v18, %v4026_v22  ;;  %v835_v28 = vand.u32 4294901760, %v834_v24 }
  0x42   :  { %v841_v29 = vand.u32 4294901760, %v840_v25  ;;  %830 = vmatprep.subr.mxu1 %v829_v27 }
  0x43   :  { %v847_v30 = vand.u32 4294901760, %v846_v26  ;;  %836 = vmatpush1.msra.mxu1 %v835_v28 }
  0x44   :  { %842 = vmatprep.subr.mxu1 %v841_v29 }
  0x45   :  { %848 = vmatpush1.msra.mxu1 %v847_v30 }
  0x46   :  { %1464 = vmatprep.subr.mxu1 %v404_v9 }
  0xb4   :  { %v231_v31 = vpop.trf.xlu0  ;;  %v2934_v11 = vpop.trf.xlu1 }
  0xb5   :  { %v281_v32 = vsel %vm279_vm1, %v231_v31, 0 }
  0xb6   :  { %v2864_v33 = vand.u32 4294901760, %v281_v32 }
  0xb8   :  { %v2867_v34 = vsub.f32 %v281_v32, %v2864_v33  ;;  %883 = vmatmul.mubr.f32.vlgmr.msra.gmra.mxu1 %v2864_v33  ;;  %v232_v35 = vpop.trf.xlu0  ;;  %v2956_v30 = vpop.trf.xlu1 }
  0xb9   :  { %v284_v36 = vsel %vm279_vm1, %v232_v35, 0  ;;  %888 = vmatprep.mubr.f32.mxu1 %v4042_v1  ;;  %1466 = vmatpush1.msra.mxu1 %v2824_v10 }
  0xba   :  { %v4033_v37 = vand.u32 4294901760, %v2867_v34  ;;  %v2874_v38 = vand.u32 4294901760, %v284_v36  ;;  %1468 = vmatprep.subr.mxu1 %v2826_v13 }
  0xbb   :  { %1470 = vmatpush1.msra.mxu1 %v2828_v14 }
  0xbc   :  { %v2879_v39 = vsub.f32 %v284_v36, %v2874_v38  ;;  %890 = vmatmul.mubr.f32.gmra.mxu1 %v2874_v38  ;;  %v233_v40 = vpop.trf.xlu0  ;;  %v448_v41 = vsub.f32 %v2867_v34, %v4033_v37  ;;  %2122 = vmatprep.subr.mxu1 %v404_v9 }
  0xbd   :  { %v287_v42 = vsel %vm279_vm1, %v233_v40, 0  ;;  %895 = vmatprep.mubr.f32.mxu1 %v4042_v1 }
  0xbe   :  { %v4032_v43 = vand.u32 4294901760, %v2879_v39  ;;  %v2888_v44 = vand.u32 4294901760, %v287_v42  ;;  %v449_v45 = vand.u32 4294901760, %v448_v41 }
  0xc0   :  { %v2891_v46 = vsub.f32 %v287_v42, %v2888_v44  ;;  %450 = vmatmul.mubr.f32.vlgmr.msra.gmra.mxu0 %v449_v45  ;;  %897 = vmatmul.mubr.f32.gmra.mxu1 %v2888_v44  ;;  %v234_v47 = vpop.trf.xlu0  ;;  %v459_v48 = vsub.f32 %v2879_v39, %v4032_v43 }
  0xc1   :  { %1139 = vmatpush1.msra.mxu0 %v2833_v16  ;;  %v290_v49 = vsel %vm279_vm1, %v234_v47, 0  ;;  %455 = vmatprep.mubr.f32.mxu0 %v4042_v1 }
  0xc2   :  { %v4030_v50 = vand.u32 4294901760, %v2891_v46  ;;  %v2901_v51 = vand.u32 4294901760, %v290_v49  ;;  %902 = vmatprep.mubr.f32.mxu1 %v4042_v1  ;;  %v460_v52 = vand.u32 4294901760, %v459_v48  ;;  %1142 = vmatprep.subr.mxu0 %v2838_v17 }
  0xc3   :  { %1145 = vmatpush1.msra.mxu0 %v2841_v18 }
  0xc4   :  { %v2907_v53 = vsub.f32 %v290_v49, %v2901_v51  ;;  %461 = vmatmul.mubr.f32.gmra.mxu0 %v460_v52  ;;  %904 = vmatmul.mubr.f32.gmra.mxu1 %v2901_v51  ;;  %v235_v54 = vpop.trf.xlu0  ;;  %v470_v55 = vsub.f32 %v2891_v46, %v4030_v50  ;;  %v2977_v52 = vpop.trf.xlu1 }
  0xc5   :  { %v293_v56 = vsel %vm279_vm1, %v235_v54, 0  ;;  %466 = vmatprep.mubr.f32.mxu0 %v4042_v1  ;;  %909 = vmatprep.mubr.f32.mxu1 %v4042_v1  ;;  %v335_v21 = vsel %vm279_vm1, %v2977_v52, 0 }
  0xc6   :  { %v4025_v57 = vand.u32 4294901760, %v2907_v53  ;;  %v2917_v58 = vand.u32 4294901760, %v293_v56  ;;  %v471_v59 = vand.u32 4294901760, %v470_v55  ;;  %1823 = vmatprep.subr.mxu0 %v827_v19 }
  0xc8   :  { %v2922_v60 = vsub.f32 %v293_v56, %v2917_v58  ;;  %472 = vmatmul.mubr.f32.gmra.mxu0 %v471_v59  ;;  %911 = vmatmul.mubr.f32.gmra.mxu1 %v2917_v58  ;;  %v236_v61 = vpop.trf.xlu0  ;;  %v481_v62 = vsub.f32 %v2907_v53, %v4025_v57 }
  0xc9   :  { %v296_v63 = vsel %vm279_vm1, %v236_v61, 0  ;;  %477 = vmatprep.mubr.f32.mxu0 %v4042_v1  ;;  %916 = vmatprep.mubr.f32.mxu1 %v4042_v1 }
  0xca   :  { %v4023_v6 = vand.u32 4294901760, %v2922_v60  ;;  %v2932_v7 = vand.u32 4294901760, %v296_v63  ;;  %v482_v9 = vand.u32 4294901760, %v481_v62 }
  0xcc   :  { %v2937_v12 = vsub.f32 %v296_v63, %v2932_v7  ;;  %483 = vmatmul.mubr.f32.gmra.mxu0 %v482_v9  ;;  %918 = vmatmul.mubr.f32.gmra.mxu1 %v2932_v7  ;;  %v237_v15 = vpop.trf.xlu0  ;;  %v492_v19 = vsub.f32 %v2922_v60, %v4023_v6 }
  0xcd   :  { %v299_v23 = vsel %vm279_vm1, %v237_v15, 0  ;;  %488 = vmatprep.mubr.f32.mxu0 %v4042_v1  ;;  %923 = vmatprep.mubr.f32.mxu1 %v4042_v1 }
  0xce   :  { %v4022_v24 = vand.u32 4294901760, %v2937_v12  ;;  %v2947_v25 = vand.u32 4294901760, %v299_v23  ;;  %v493_v26 = vand.u32 4294901760, %v492_v19 }
  0xd0   :  { %v2950_v27 = vsub.f32 %v299_v23, %v2947_v25  ;;  %494 = vmatmul.mubr.f32.gmra.mxu0 %v493_v26  ;;  %925 = vmatmul.mubr.f32.gmra.mxu1 %v2947_v25  ;;  %v238_v28 = vpop.trf.xlu0  ;;  %v503_v29 = vsub.f32 %v2937_v12, %v4022_v24  ;;  %v2999_v23 = vpop.trf.xlu1 }
  0xd1   :  { %v302_v31 = vsel %vm279_vm1, %v238_v28, 0  ;;  %499 = vmatprep.mubr.f32.mxu0 %v4042_v1  ;;  %930 = vmatprep.mubr.f32.mxu1 %v4042_v1  ;;  %v338_v50 = vsel %vm279_vm1, %v2999_v23, 0 }
  0xd2   :  { %v4021_v32 = vand.u32 4294901760, %v2950_v27  ;;  %v2962_v35 = vand.u32 4294901760, %v302_v31  ;;  %v504_v36 = vand.u32 4294901760, %v503_v29 }
  0xd4   :  { %v2965_v40 = vsub.f32 %v302_v31, %v2962_v35  ;;  %505 = vmatmul.mubr.f32.gmra.mxu0 %v504_v36  ;;  %932 = vmatmul.mubr.f32.gmra.mxu1 %v2962_v35  ;;  %v239_v41 = vpop.trf.xlu0  ;;  %v514_v42 = vsub.f32 %v2950_v27, %v4021_v32  ;;  %v332_v32 = vsel %vm279_vm1, %v2956_v30, 0 }
  0xd5   :  { %v305_v45 = vsel %vm279_vm1, %v239_v41, 0  ;;  %510 = vmatprep.mubr.f32.mxu0 %v4042_v1  ;;  %937 = vmatprep.mubr.f32.mxu1 %v4042_v1  ;;  %v3082_v30 = vand.u32 4294901760, %v332_v32 }
  0xd6   :  { %v4020_v47 = vand.u32 4294901760, %v2965_v40  ;;  %v2975_v48 = vand.u32 4294901760, %v305_v45  ;;  %v515_v49 = vand.u32 4294901760, %v514_v42 }
  0xd7   :  { %4087 = vst [vmem:[#allocation25_spill] sm:$0xff] %v3082_v30  ;;  %v3097_v20 = vsub.f32 %v332_v32, %v3082_v30 }
  0xd8   :  { %v2980_v54 = vsub.f32 %v305_v45, %v2975_v48  ;;  %516 = vmatmul.mubr.f32.gmra.mxu0 %v515_v49  ;;  %939 = vmatmul.mubr.f32.gmra.mxu1 %v2975_v48  ;;  %v240_v55 = vpop.trf.xlu0  ;;  %v525_v56 = vsub.f32 %v2965_v40, %v4020_v47 }
  0xd9   :  { %v308_v59 = vsel %vm279_vm1, %v240_v55, 0  ;;  %521 = vmatprep.mubr.f32.mxu0 %v4042_v1  ;;  %944 = vmatprep.mubr.f32.mxu1 %v4042_v1 }
  0xda   :  { %v4018_v61 = vand.u32 4294901760, %v2980_v54  ;;  %v2990_v62 = vand.u32 4294901760, %v308_v59  ;;  %v526_v63 = vand.u32 4294901760, %v525_v56 }
  0xdc   :  { %v2993_v9 = vsub.f32 %v308_v59, %v2990_v62  ;;  %527 = vmatmul.mubr.f32.gmra.mxu0 %v526_v63  ;;  %946 = vmatmul.mubr.f32.gmra.mxu1 %v2990_v62  ;;  %v241_v15 = vpop.trf.xlu0  ;;  %v536_v19 = vsub.f32 %v2980_v54, %v4018_v61  ;;  %v3020_v59 = vpop.trf.xlu1 }
  0xdd   :  { %v311_v26 = vsel %vm279_vm1, %v241_v15, 0  ;;  %532 = vmatprep.mubr.f32.mxu0 %v4042_v1  ;;  %951 = vmatprep.mubr.f32.mxu1 %v4042_v1 }
  0xde   :  { %v4017_v28 = vand.u32 4294901760, %v2993_v9  ;;  %v3005_v29 = vand.u32 4294901760, %v311_v26  ;;  %v537_v31 = vand.u32 4294901760, %v536_v19 }
  0xe0   :  { %v3008_v36 = vsub.f32 %v311_v26, %v3005_v29  ;;  %538 = vmatmul.mubr.f32.gmra.mxu0 %v537_v31  ;;  %953 = vmatmul.mubr.f32.gmra.mxu1 %v3005_v29  ;;  %v242_v41 = vpop.trf.xlu0  ;;  %v547_v42 = vsub.f32 %v2993_v9, %v4017_v28  ;;  %v3042_v0 = vpop.trf.xlu1  ;;  %v329_v28 = vsel %vm279_vm1, %v2934_v11, 0 }
  0xe1   :  { %v314_v45 = vsel %vm279_vm1, %v242_v41, 0  ;;  %543 = vmatprep.mubr.f32.mxu0 %v4042_v1  ;;  %958 = vmatprep.mubr.f32.mxu1 %v4042_v1 }
  0xe2   :  { %v4016_v49 = vand.u32 4294901760, %v3008_v36  ;;  %v3018_v55 = vand.u32 4294901760, %v314_v45  ;;  %v548_v56 = vand.u32 4294901760, %v547_v42 }
  0xe4   :  { %v3023_v63 = vsub.f32 %v314_v45, %v3018_v55  ;;  %549 = vmatmul.mubr.f32.gmra.mxu0 %v548_v56  ;;  %960 = vmatmul.mubr.f32.gmra.mxu1 %v3018_v55  ;;  %v243_v15 = vpop.trf.xlu0  ;;  %v558_v19 = vsub.f32 %v3008_v36, %v4016_v49  ;;  %v269_v24 = vpop.trf.xlu1 }
  0xe5   :  { %v317_v26 = vsel %vm279_vm1, %v243_v15, 0  ;;  %554 = vmatprep.mubr.f32.mxu0 %v4042_v1  ;;  %965 = vmatprep.mubr.f32.mxu1 %v4042_v1 }
  0xe6   :  { %v4019_v31 = vand.u32 4294901760, %v3023_v63  ;;  %v3033_v41 = vand.u32 4294901760, %v317_v26  ;;  %v559_v42 = vand.u32 4294901760, %v558_v19 }
  0xe8   :  { %v3036_v45 = vsub.f32 %v317_v26, %v3033_v41  ;;  %560 = vmatmul.mubr.f32.gmra.mxu0 %v559_v42  ;;  %967 = vmatmul.mubr.f32.gmra.mxu1 %v3033_v41  ;;  %v244_v56 = vpop.trf.xlu0  ;;  %v569_v15 = vsub.f32 %v3023_v63, %v4019_v31 }
  0xe9   :  { %v320_v49 = vsel %vm279_vm1, %v244_v56, 0  ;;  %565 = vmatprep.mubr.f32.mxu0 %v4042_v1  ;;  %972 = vmatprep.mubr.f32.mxu1 %v4042_v1 }
  0xea   :  { %v4024_v19 = vand.u32 4294901760, %v3036_v45  ;;  %v3048_v26 = vand.u32 4294901760, %v320_v49  ;;  %v570_v42 = vand.u32 4294901760, %v569_v15  ;;  %v3062_v15 = vand.u32 4294901760, %v329_v28 }
  0xec   :  { %4084 = vst [vmem:[#allocation22_spill] sm:$0xff] %v3048_v26  ;;  %v3053_v61 = vsub.f32 %v320_v49, %v3048_v26  ;;  %571 = vmatmul.mubr.f32.gmra.mxu0 %v570_v42  ;;  %974 = vmatmul.mubr.f32.gmra.mxu1 %v3048_v26  ;;  %v245_v31 = vpop.trf.xlu0  ;;  %v580_v56 = vsub.f32 %v3036_v45, %v4024_v19  ;;  %4085 = vst [vmem:[#allocation23_spill] sm:$0xff] %v3062_v15 }
  0xed   :  { %v323_v47 = vsel %vm279_vm1, %v245_v31, 0  ;;  %576 = vmatprep.mubr.f32.mxu0 %v4042_v1  ;;  %979 = vmatprep.mubr.f32.mxu1 %v4042_v1  ;;  %v3077_v57 = vsub.f32 %v329_v28, %v3062_v15 }
  0xee   :  { %v4028_v11 = vand.u32 4294901760, %v3053_v61  ;;  %v3065_v49 = vand.u32 4294901760, %v323_v47  ;;  %v581_v42 = vand.u32 4294901760, %v580_v56 }
  0xef   :  { %v4036_v52 = vand.u32 4294901760, %v3077_v57 }
  0xf0   :  { %4086 = vst [vmem:[#allocation24_spill] sm:$0xff] %v3065_v49  ;;  %v3070_v6 = vsub.f32 %v323_v47, %v3065_v49  ;;  %582 = vmatmul.mubr.f32.gmra.mxu0 %v581_v42  ;;  %981 = vmatmul.mubr.f32.gmra.mxu1 %v3065_v49  ;;  %v246_v31 = vpop.trf.xlu0  ;;  %v591_v19 = vsub.f32 %v3053_v61, %v4028_v11 }
  0xf1   :  { %v326_v56 = vsel %vm279_vm1, %v246_v31, 0  ;;  %587 = vmatprep.mubr.f32.mxu0 %v4042_v1  ;;  %986 = vmatprep.mubr.f32.mxu1 %v4042_v1  ;;  %v270_v31 = vpop.trf.xlu1  ;;  %v624_v23 = vsub.f32 %v3077_v57, %v4036_v52 }
  0xf2   :  { %v4031_v47 = vand.u32 4294901760, %v3070_v6  ;;  %v3085_v42 = vand.u32 4294901760, %v326_v56  ;;  %v592_v22 = vand.u32 4294901760, %v591_v19  ;;  %v3101_v19 = vand.u32 4294901760, %v335_v21 }
  0xf3   :  { %v625_v8 = vand.u32 4294901760, %v624_v23 }
  0xf4   :  { %4088 = vst [vmem:[#allocation26_spill] sm:$0xff] %v3085_v42  ;;  %v3090_v11 = vsub.f32 %v326_v56, %v3085_v42  ;;  %593 = vmatmul.mubr.f32.gmra.mxu0 %v592_v22  ;;  %988 = vmatmul.mubr.f32.gmra.mxu1 %v3085_v42  ;;  %v602_v28 = vsub.f32 %v3070_v6, %v4031_v47  ;;  %4089 = vst [vmem:[#allocation27_spill] sm:$0xff] %v3101_v19  ;;  %v4038_v47 = vand.u32 4294901760, %v3097_v20 }
  0xf5   :  { %598 = vmatprep.mubr.f32.mxu0 %v4042_v1  ;;  %993 = vmatprep.mubr.f32.mxu1 %v4042_v1  ;;  %v3113_v43 = vsub.f32 %v335_v21, %v3101_v19 }
  0xf6   :  { %v4034_v22 = vand.u32 4294901760, %v3090_v11  ;;  %v603_v56 = vand.u32 4294901760, %v602_v28  ;;  %v3117_v28 = vand.u32 4294901760, %v338_v50 }
  0xf8   :  { %604 = vmatmul.mubr.f32.gmra.mxu0 %v603_v56  ;;  %995 = vmatmul.mubr.f32.gmra.mxu1 %v3062_v15  ;;  %v613_v32 = vsub.f32 %v3090_v11, %v4034_v22  ;;  %4090 = vst [vmem:[#allocation28_spill] sm:$0xff] %v3117_v28  ;;  %v271_v56 = vpop.trf.xlu1  ;;  %v341_v22 = vsel %vm279_vm1, %v3020_v59, 0  ;;  %v3132_v2 = vsub.f32 %v338_v50, %v3117_v28 }
  0xf9   :  { %609 = vmatprep.mubr.f32.mxu0 %v4042_v1  ;;  %1000 = vmatprep.mubr.f32.mxu1 %v4042_v1  ;;  %v3134_v52 = vand.u32 4294901760, %v341_v22 }
  0xfa   :  { %v614_v37 = vand.u32 4294901760, %v613_v32  ;;  %v635_v32 = vsub.f32 %v3097_v20, %v4038_v47  ;;  %v4092_v47 = vand.u32 4294901760, %v3113_v43  ;;  %v4095_v3 = vand.u32 4294901760, %v3132_v2 }
  0xfb   :  { %4091 = vst [vmem:[#allocation29_spill] sm:$0xff] %v3134_v52  ;;  %v3146_v23 = vsub.f32 %v341_v22, %v3134_v52  ;;  %v350_v22 = vsel %vm279_vm1, %v270_v31, 0 }
  0xfc   :  { %615 = vmatmul.mubr.f32.gmra.mxu0 %v614_v37  ;;  %1002 = vmatmul.mubr.f32.gmra.mxu1 %v3082_v30  ;;  %v344_v37 = vsel %vm279_vm1, %v3042_v0, 0  ;;  %v272_v59 = vpop.trf.xlu1  ;;  %v636_v21 = vand.u32 4294901760, %v635_v32  ;;  %v646_v50 = vsub.f32 %v3113_v43, %v4092_v47  ;;  %v347_v0 = vsel %vm279_vm1, %v269_v24, 0 }
  0xfd   :  { %620 = vmatprep.mubr.f32.mxu0 %v4042_v1  ;;  %1007 = vmatprep.mubr.f32.mxu1 %v4042_v1  ;;  %v3148_v5 = vand.u32 4294901760, %v344_v37  ;;  %v4050_v47 = vand.u32 4294901760, %v3146_v23  ;;  %v657_v24 = vsub.f32 %v3132_v2, %v4095_v3 }
  0xfe   :  { %v647_v32 = vand.u32 4294901760, %v646_v50  ;;  %v3170_v50 = vand.u32 4294901760, %v350_v22 }
  0xff   :  { %4093 = vst [vmem:[#allocation30_spill] sm:$0xff] %v3148_v5  ;;  %v3158_v4 = vsub.f32 %v344_v37, %v3148_v5  ;;  %v658_v31 = vand.u32 4294901760, %v657_v24  ;;  %v668_v3 = vsub.f32 %v3146_v23, %v4050_v47 }
 0x100   :  { %626 = vmatmul.mubr.f32.gmra.mxu0 %v625_v8  ;;  %1009 = vmatmul.mubr.f32.gmra.mxu1 %v3101_v19  ;;  %v3154_v8 = vand.u32 4294901760, %v347_v0  ;;  %4097 = vst [vmem:[#allocation32_spill] sm:$0xff] %v3170_v50  ;;  %v3180_v19 = vsub.f32 %v350_v22, %v3170_v50 }
 0x101   :  { %631 = vmatprep.mubr.f32.mxu0 %v4042_v1  ;;  %1014 = vmatprep.mubr.f32.mxu1 %v4042_v1  ;;  %v669_v37 = vand.u32 4294901760, %v668_v3  ;;  %v4099_v47 = vand.u32 4294901760, %v3158_v4 }
 0x102   :  { %4094 = vst [vmem:[#allocation31_spill] sm:$0xff] %v3154_v8 }
 0x104   :  { %637 = vmatmul.mubr.f32.gmra.mxu0 %v636_v21  ;;  %1016 = vmatmul.mubr.f32.gmra.mxu1 %v3117_v28  ;;  %v273_v21 = vpop.trf.xlu1  ;;  %v4096_v28 = vmov 0.0  }
 0x105   :  { %642 = vmatprep.mubr.f32.mxu0 %v4042_v1  ;;  %1021 = vmatprep.mubr.f32.mxu1 %v4042_v1  ;;  %v3166_v1 = vsub.f32 %v347_v0, %v3154_v8 }
 0x107   :  { %v4100_v22 = vand.u32 4294901760, %v3166_v1 }
 0x108   :  { %648 = vmatmul.mubr.f32.gmra.mxu0 %v647_v32  ;;  %1023 = vmatmul.mubr.f32.gmra.mxu1 %v3134_v52  ;;  %v353_v32 = vsel %vm279_vm1, %v271_v56, 0  ;;  %v274_v0 = vpop.trf.xlu1  ;;  %v679_v56 = vsub.f32 %v3158_v4, %v4099_v47 }
 0x109   :  { %653 = vmatprep.mubr.f32.mxu0 %v4096_v28  ;;  %1028 = vmatprep.mubr.f32.mxu1 %v4096_v28  ;;  %v3184_v24 = vand.u32 4294901760, %v353_v32 }
 0x10a   :  { %v680_v47 = vand.u32 4294901760, %v679_v56 }
 0x10b   :  { %4098 = vst [vmem:[#allocation33_spill] sm:$0xff] %v3184_v24  ;;  %v3198_v3 = vsub.f32 %v353_v32, %v3184_v24 }
 0x10c   :  { %659 = vmatmul.mubr.f32.gmra.mxu0 %v658_v31  ;;  %1030 = vmatmul.mubr.f32.gmra.mxu1 %v3148_v5  ;;  %v356_v31 = vsel %vm279_vm1, %v272_v59, 0  ;;  %v690_v5 = vsub.f32 %v3166_v1, %v4100_v22  ;;  %v275_v59 = vpop.trf.xlu1 }
 0x10d   :  { %664 = vmatprep.mubr.f32.mxu0 %v4096_v28  ;;  %1035 = vmatprep.mubr.f32.mxu1 %v4096_v28  ;;  %v3200_v30 = vand.u32 4294901760, %v356_v31 }
 0x10e   :  { %v691_v52 = vand.u32 4294901760, %v690_v5 }
 0x10f   :  { %4101 = vst [vmem:[#allocation34_spill] sm:$0xff] %v3200_v30  ;;  %v3211_v15 = vsub.f32 %v356_v31, %v3200_v30 }
 0x110   :  { %670 = vmatmul.mubr.f32.gmra.mxu0 %v669_v37  ;;  %1037 = vmatmul.mubr.f32.gmra.mxu1 %v3154_v8  ;;  %v359_v37 = vsel %vm279_vm1, %v273_v21, 0  ;;  %v4102_v8 = vand.u32 4294901760, %v3180_v19  ;;  %v362_v21 = vsel %vm279_vm1, %v274_v0, 0 }
 0x111   :  { %675 = vmatprep.mubr.f32.mxu0 %v4096_v28  ;;  %1042 = vmatprep.mubr.f32.mxu1 %v4096_v28  ;;  %v3213_v56 = vand.u32 4294901760, %v359_v37  ;;  %v3219_v5 = vand.u32 4294901760, %v362_v21  ;;  %v4106_v42 = vand.u32 4294901760, %v3211_v15 }
 0x112   :  { %v701_v22 = vsub.f32 %v3180_v19, %v4102_v8 }
 0x113   :  { %4103 = vst [vmem:[#allocation35_spill] sm:$0xff] %v3213_v56  ;;  %4104 = vst [vmem:[#allocation36_spill] sm:$0xff] %v3219_v5  ;;  %v3223_v32 = vsub.f32 %v359_v37, %v3213_v56 }
 0x114   :  { %681 = vmatmul.mubr.f32.gmra.mxu0 %v680_v47  ;;  %1044 = vmatmul.mubr.f32.gmra.mxu1 %v3170_v50  ;;  %v276_v47 = vpop.trf.xlu1  ;;  %v702_v31 = vand.u32 4294901760, %v701_v22  ;;  %v4105_v50 = vand.u32 4294901760, %v3198_v3 }
 0x115   :  { %686 = vmatprep.mubr.f32.mxu0 %v4096_v28  ;;  %1049 = vmatprep.mubr.f32.mxu1 %v4096_v28 }
 0x116   :  { %v712_v0 = vsub.f32 %v3198_v3, %v4105_v50  ;;  %v723_v50 = vsub.f32 %v3211_v15, %v4106_v42  ;;  %v4107_v42 = vand.u32 4294901760, %v3223_v32 }
 0x118   :  { %692 = vmatmul.mubr.f32.gmra.mxu0 %v691_v52  ;;  %1051 = vmatmul.mubr.f32.gmra.mxu1 %v3184_v24  ;;  %v365_v52 = vsel %vm279_vm1, %v275_v59, 0  ;;  %v3231_v24 = vsub.f32 %v362_v21, %v3219_v5  ;;  %v713_v22 = vand.u32 4294901760, %v712_v0  ;;  %v277_v59 = vpop.trf.xlu1  ;;  %v734_v49 = vsub.f32 %v3223_v32, %v4107_v42 }
 0x119   :  { %697 = vmatprep.mubr.f32.mxu0 %v4096_v28  ;;  %1056 = vmatprep.mubr.f32.mxu1 %v4096_v28  ;;  %v3236_v8 = vand.u32 4294901760, %v365_v52 }
 0x11a   :  { %v4073_v21 = vand.u32 4294901760, %v3231_v24 }
 0x11b   :  { %v3247_v37 = vsub.f32 %v365_v52, %v3236_v8 }
 0x11c   :  { %703 = vmatmul.mubr.f32.gmra.mxu0 %v702_v31  ;;  %1058 = vmatmul.mubr.f32.gmra.mxu1 %v3200_v30  ;;  %v368_v31 = vsel %vm279_vm1, %v276_v47, 0  ;;  %v724_v30 = vand.u32 4294901760, %v723_v50  ;;  %v371_v47 = vsel %vm279_vm1, %v277_v59, 0  ;;  %v745_v52 = vsub.f32 %v3231_v24, %v4073_v21 }
 0x11d   :  { %708 = vmatprep.mubr.f32.mxu0 %v4096_v28  ;;  %1063 = vmatprep.mubr.f32.mxu1 %v4096_v28  ;;  %v3249_v0 = vand.u32 4294901760, %v368_v31  ;;  %v3265_v42 = vand.u32 4294901760, %v371_v47  ;;  %v735_v59 = vand.u32 4294901760, %v734_v49  ;;  %v4108_v26 = vand.u32 4294901760, %v3247_v37 }
 0x11f   :  { %v3273_v50 = vsub.f32 %v371_v47, %v3265_v42  ;;  %v756_v49 = vsub.f32 %v3247_v37, %v4108_v26 }
 0x120   :  { %714 = vmatmul.mubr.f32.gmra.mxu0 %v713_v22  ;;  %1065 = vmatmul.mubr.f32.gmra.mxu1 %v3213_v56  ;;  %v278_v22 = vpop.trf.xlu1  ;;  %v3263_v56 = vsub.f32 %v368_v31, %v3249_v0 }
 0x121   :  { %719 = vmatprep.mubr.f32.mxu0 %v4096_v28  ;;  %1070 = vmatprep.mubr.f32.mxu1 %v4096_v28  ;;  %v757_v47 = vand.u32 4294901760, %v756_v49 }
 0x122   :  { %v4076_v21 = vand.u32 4294901760, %v3263_v56 }
 0x124   :  { %725 = vmatmul.mubr.f32.gmra.mxu0 %v724_v30  ;;  %1072 = vmatmul.mubr.f32.gmra.mxu1 %v3219_v5  ;;  %v374_v30 = vsel %vm279_vm1, %v278_v22, 0  ;;  %v746_v5 = vand.u32 4294901760, %v745_v52  ;;  %v777_v22 = vand.u32 4294901760, %v3273_v50 }
 0x125   :  { %730 = vmatprep.mubr.f32.mxu0 %v4096_v28  ;;  %1077 = vmatprep.mubr.f32.mxu1 %v4096_v28  ;;  %v3275_v31 = vand.u32 4294901760, %v374_v30 }
 0x127   :  { %v3285_v52 = vsub.f32 %v374_v30, %v3275_v31  ;;  %v778_v30 = vsub.f32 %v3273_v50, %v777_v22 }
 0x128   :  { %736 = vmatmul.mubr.f32.gmra.mxu0 %v735_v59  ;;  %1079 = vmatmul.mubr.f32.gmra.mxu1 %v3236_v8  ;;  %v767_v59 = vsub.f32 %v3263_v56, %v4076_v21  ;;  %v4109_v21 = vand.u32 4294901760, %v2867_v34 }
 0x129   :  { %741 = vmatprep.mubr.f32.mxu0 %v4096_v28  ;;  %1084 = vmatprep.mubr.f32.mxu1 %v4096_v28  ;;  %v788_v26 = vand.u32 4294901760, %v3285_v52  ;;  %v779_v49 = vand.u32 4294901760, %v778_v30  ;;  %v4112_v30 = vand.u32 4294901760, %v2833_v16  ;;  %v4116_v16 = vand.u32 4294901760, %v2922_v60 }
 0x12c   :  { %747 = vmatmul.mubr.f32.gmra.mxu0 %v746_v5  ;;  %1086 = vmatmul.mubr.f32.gmra.mxu1 %v3249_v0  ;;  %v768_v5 = vand.u32 4294901760, %v767_v59 }
 0x12d   :  { %752 = vmatprep.mubr.f32.mxu0 %v4096_v28  ;;  %1091 = vmatprep.mubr.f32.mxu1 %v4096_v28 }
 0x130   :  { %758 = vmatmul.mubr.f32.gmra.mxu0 %v757_v47  ;;  %1093 = vmatmul.mubr.f32.gmra.mxu1 %v3265_v42  ;;  %v789_v47 = vsub.f32 %v3285_v52, %v788_v26 }
 0x131   :  { %763 = vmatprep.mubr.f32.mxu0 %v4096_v28  ;;  %1098 = vmatprep.mubr.f32.mxu1 %v4096_v28 }
 0x132   :  { %v790_v59 = vand.u32 4294901760, %v789_v47 }
 0x134   :  { %769 = vmatmul.mubr.f32.gmra.mxu0 %v768_v5  ;;  %1100 = vmatmul.mubr.f32.gmra.mxu1 %v3275_v31  ;;  %v4110_v5 = vand.u32 4294901760, %v2879_v39 }
 0x135   :  { %774 = vmatprep.mubr.f32.mxu0 %v4096_v28  ;;  %1503 = vmatprep.mubr.f32.mxu1 %v4096_v28 }
 0x138   :  { %780 = vmatmul.mubr.f32.gmra.mxu0 %v779_v49  ;;  %1507 = vmatmul.mubr.f32.vlgmr.msra.gmra.mxu1 %v4109_v21  ;;  %v4111_v21 = vand.u32 4294901760, %v2891_v46 }
 0x139   :  { %785 = vmatprep.mubr.f32.mxu0 %v4096_v28  ;;  %1512 = vmatprep.mubr.f32.mxu1 %v4096_v28 }
 0x13a   :  { %2124 = vmatpush1.msra.mxu1 %v2824_v10  ;;  %v4113_v10 = vand.u32 4294901760, %v2838_v17  ;;  %v4117_v17 = vand.u32 4294901760, %v2937_v12 }
 0x13b   :  { %2126 = vmatprep.subr.mxu1 %v2826_v13  ;;  %v4114_v13 = vand.u32 4294901760, %v2841_v18  ;;  %v4118_v18 = vand.u32 4294901760, %v2950_v27 }
 0x13c   :  { %791 = vmatmul.mubr.f32.gmra.mxu0 %v790_v59  ;;  %1516 = vmatmul.mubr.f32.gmra.mxu1 %v4110_v5  ;;  %v4130_v59 = vand.u32 4294901760, %v3113_v43 }
 0x13d   :  { %1178 = vmatprep.mubr.f32.mxu0 %v4096_v28  ;;  %1521 = vmatprep.mubr.f32.mxu1 %v4096_v28 }
 0x13e   :  { %2128 = vmatpush1.msra.mxu1 %v2828_v14  ;;  %v4115_v14 = vand.u32 4294901760, %v2907_v53 }
 0x140   :  { %1181 = vmatmul.mubr.f32.vlgmr.msra.gmra.mxu0 %v2867_v34  ;;  %1525 = vmatmul.mubr.f32.gmra.mxu1 %v4111_v21  ;;  %v4119_v34 = vand.u32 4294901760, %v2965_v40 }
 0x141   :  { %1827 = vmatpush1.msra.mxu0 %v4112_v30  ;;  %1186 = vmatprep.mubr.f32.mxu0 %v4096_v28 }
 0x142   :  { %1530 = vmatprep.mubr.f32.mxu1 %v4096_v28  ;;  %1831 = vmatprep.subr.mxu0 %v4113_v10 }
 0x143   :  { %1835 = vmatpush1.msra.mxu0 %v4114_v13 }
 0x144   :  { %1189 = vmatmul.mubr.f32.gmra.mxu0 %v2879_v39  ;;  %1534 = vmatmul.mubr.f32.gmra.mxu1 %v4115_v14  ;;  %v4120_v39 = vand.u32 4294901760, %v2980_v54  ;;  %v4131_v14 = vand.u32 4294901760, %v3132_v2 }
 0x145   :  { %1194 = vmatprep.mubr.f32.mxu0 %v4096_v28  ;;  %1539 = vmatprep.mubr.f32.mxu1 %v4096_v28 }
 0x148   :  { %1197 = vmatmul.mubr.f32.gmra.mxu0 %v2891_v46  ;;  %1543 = vmatmul.mubr.f32.gmra.mxu1 %v4116_v16  ;;  %v4121_v46 = vand.u32 4294901760, %v2993_v9 }
 0x149   :  { %1202 = vmatprep.mubr.f32.mxu0 %v4096_v28  ;;  %1548 = vmatprep.mubr.f32.mxu1 %v4096_v28 }
 0x14c   :  { %1205 = vmatmul.mubr.f32.gmra.mxu0 %v2907_v53  ;;  %1552 = vmatmul.mubr.f32.gmra.mxu1 %v4117_v17  ;;  %v4122_v53 = vand.u32 4294901760, %v3008_v36 }
 0x14d   :  { %1210 = vmatprep.mubr.f32.mxu0 %v4096_v28  ;;  %1557 = vmatprep.mubr.f32.mxu1 %v4096_v28 }
 0x150   :  { %1213 = vmatmul.mubr.f32.gmra.mxu0 %v2922_v60  ;;  %1561 = vmatmul.mubr.f32.gmra.mxu1 %v4118_v18  ;;  %v4123_v60 = vand.u32 4294901760, %v3023_v63 }
 0x151   :  { %1218 = vmatprep.mubr.f32.mxu0 %v4096_v28  ;;  %1566 = vmatprep.mubr.f32.mxu1 %v4096_v28 }
 0x154   :  { %1221 = vmatmul.mubr.f32.gmra.mxu0 %v2937_v12  ;;  %1570 = vmatmul.mubr.f32.gmra.mxu1 %v4119_v34  ;;  %v4124_v12 = vand.u32 4294901760, %v3036_v45 }
 0x155   :  { %1226 = vmatprep.mubr.f32.mxu0 %v4096_v28  ;;  %1575 = vmatprep.mubr.f32.mxu1 %v4096_v28 }
 0x158   :  { %1229 = vmatmul.mubr.f32.gmra.mxu0 %v2950_v27  ;;  %1579 = vmatmul.mubr.f32.gmra.mxu1 %v4120_v39  ;;  %v4125_v27 = vand.u32 4294901760, %v3053_v61 }
 0x159   :  { %1234 = vmatprep.mubr.f32.mxu0 %v4096_v28  ;;  %1584 = vmatprep.mubr.f32.mxu1 %v4096_v28 }
 0x15c   :  { %1237 = vmatmul.mubr.f32.gmra.mxu0 %v2965_v40  ;;  %1588 = vmatmul.mubr.f32.gmra.mxu1 %v4121_v46  ;;  %v4126_v40 = vand.u32 4294901760, %v3070_v6  ;;  %v4132_v46 = vand.u32 4294901760, %v3146_v23 }
 0x15d   :  { %1242 = vmatprep.mubr.f32.mxu0 %v4096_v28  ;;  %1593 = vmatprep.mubr.f32.mxu1 %v4096_v28 }
 0x160   :  { %1245 = vmatmul.mubr.f32.gmra.mxu0 %v2980_v54  ;;  %1597 = vmatmul.mubr.f32.gmra.mxu1 %v4122_v53  ;;  %v4127_v54 = vand.u32 4294901760, %v3090_v11 }
 0x161   :  { %1250 = vmatprep.mubr.f32.mxu0 %v4096_v28  ;;  %1602 = vmatprep.mubr.f32.mxu1 %v4096_v28 }
 0x164   :  { %1253 = vmatmul.mubr.f32.gmra.mxu0 %v2993_v9  ;;  %1606 = vmatmul.mubr.f32.gmra.mxu1 %v4123_v60 }
 0x165   :  { %1258 = vmatprep.mubr.f32.mxu0 %v4096_v28  ;;  %1611 = vmatprep.mubr.f32.mxu1 %v4096_v28 }
 0x168   :  { %1261 = vmatmul.mubr.f32.gmra.mxu0 %v3008_v36  ;;  %1615 = vmatmul.mubr.f32.gmra.mxu1 %v4124_v12  ;;  %v4128_v36 = vand.u32 4294901760, %v3077_v57 }
 0x169   :  { %1266 = vmatprep.mubr.f32.mxu0 %v4096_v28  ;;  %1620 = vmatprep.mubr.f32.mxu1 %v4096_v28 }
 0x16c   :  { %1269 = vmatmul.mubr.f32.gmra.mxu0 %v3023_v63  ;;  %1624 = vmatmul.mubr.f32.gmra.mxu1 %v4125_v27 }
 0x16d   :  { %1274 = vmatprep.mubr.f32.mxu0 %v4096_v28  ;;  %1629 = vmatprep.mubr.f32.mxu1 %v4096_v28 }
 0x170   :  { %1277 = vmatmul.mubr.f32.gmra.mxu0 %v3036_v45  ;;  %1633 = vmatmul.mubr.f32.gmra.mxu1 %v4126_v40 }
 0x171   :  { %1282 = vmatprep.mubr.f32.mxu0 %v4096_v28  ;;  %1638 = vmatprep.mubr.f32.mxu1 %v4096_v28 }
 0x174   :  { %1285 = vmatmul.mubr.f32.gmra.mxu0 %v3053_v61  ;;  %1642 = vmatmul.mubr.f32.gmra.mxu1 %v4127_v54  ;;  %v4129_v61 = vand.u32 4294901760, %v3097_v20  ;;  %v4133_v54 = vand.u32 4294901760, %v3158_v4 }
 0x175   :  { %1290 = vmatprep.mubr.f32.mxu0 %v4096_v28  ;;  %1647 = vmatprep.mubr.f32.mxu1 %v4096_v28 }
 0x178   :  { %v884_v9 = vpop.f32.mrf.mxu1  ;;  %1293 = vmatmul.mubr.f32.gmra.mxu0 %v3070_v6  ;;  %1651 = vmatmul.mubr.f32.gmra.mxu1 %v4128_v36 }
 0x179   :  { %1298 = vmatprep.mubr.f32.mxu0 %v4096_v28  ;;  %1656 = vmatprep.mubr.f32.mxu1 %v4096_v28 }
 0x17a   :  { %v886_v63 = vpop.f32.mrf.mxu1 }
 0x17c   :  { %v891_v45 = vpop.f32.mrf.mxu1  ;;  %1301 = vmatmul.mubr.f32.gmra.mxu0 %v3090_v11  ;;  %1660 = vmatmul.mubr.f32.gmra.mxu1 %v4129_v61 }
 0x17d   :  { %1306 = vmatprep.mubr.f32.mxu0 %v4096_v28  ;;  %1665 = vmatprep.mubr.f32.mxu1 %v4096_v28 }
 0x17e   :  { %v893_v49 = vpop.f32.mrf.mxu1 }
 0x180   :  { %v451_v6 = vpop.f32.mrf.mxu0  ;;  %v898_v47 = vpop.f32.mrf.mxu1  ;;  %1309 = vmatmul.mubr.f32.gmra.mxu0 %v3077_v57  ;;  %1669 = vmatmul.mubr.f32.gmra.mxu1 %v4130_v59 }
 0x181   :  { %v3403_v5 = vadd.f32 %v884_v9, %v451_v6  ;;  %1314 = vmatprep.mubr.f32.mxu0 %v4096_v28  ;;  %1674 = vmatprep.mubr.f32.mxu1 %v4096_v28 }
 0x182   :  { %v453_v11 = vpop.f32.mrf.mxu0  ;;  %v900_v21 = vpop.f32.mrf.mxu1 }
 0x183   :  { %v3407_v30 = vadd.f32 %v886_v63, %v453_v11 }
 0x184   :  { %v462_v10 = vpop.f32.mrf.mxu0  ;;  %v905_v13 = vpop.f32.mrf.mxu1  ;;  %1317 = vmatmul.mubr.f32.gmra.mxu0 %v3097_v20  ;;  %1678 = vmatmul.mubr.f32.gmra.mxu1 %v4131_v14 }
 0x185   :  { %v3412_v57 = vadd.f32 %v891_v45, %v462_v10  ;;  %1322 = vmatprep.mubr.f32.mxu0 %v4096_v28  ;;  %1683 = vmatprep.mubr.f32.mxu1 %v4096_v28  ;;  %v4135_v10 = vand.u32 4294901760, %v3180_v19 }
 0x186   :  { %v464_v16 = vpop.f32.mrf.mxu0  ;;  %v907_v17 = vpop.f32.mrf.mxu1 }
 0x187   :  { %v3416_v18 = vadd.f32 %v893_v49, %v464_v16  ;;  %v4134_v49 = vand.u32 4294901760, %v3166_v1 }
 0x188   :  { %v473_v34 = vpop.f32.mrf.mxu0  ;;  %v912_v39 = vpop.f32.mrf.mxu1  ;;  %1325 = vmatmul.mubr.f32.gmra.mxu0 %v3113_v43  ;;  %1687 = vmatmul.mubr.f32.gmra.mxu1 %v4132_v46 }
 0x189   :  { %v3421_v20 = vadd.f32 %v898_v47, %v473_v34  ;;  %1330 = vmatprep.mubr.f32.mxu0 %v4096_v28  ;;  %1692 = vmatprep.mubr.f32.mxu1 %v4096_v28 }
 0x18a   :  { %v475_v53 = vpop.f32.mrf.mxu0  ;;  %v914_v60 = vpop.f32.mrf.mxu1 }
 0x18b   :  { %v3425_v12 = vadd.f32 %v900_v21, %v475_v53 }
 0x18c   :  { %v484_v27 = vpop.f32.mrf.mxu0  ;;  %v919_v40 = vpop.f32.mrf.mxu1  ;;  %1333 = vmatmul.mubr.f32.gmra.mxu0 %v3132_v2  ;;  %1696 = vmatmul.mubr.f32.gmra.mxu1 %v4133_v54  ;;  %v4137_v54 = vand.u32 4294901760, %v3211_v15 }
 0x18d   :  { %v3430_v43 = vadd.f32 %v905_v13, %v484_v27  ;;  %1338 = vmatprep.mubr.f32.mxu0 %v4096_v28  ;;  %1701 = vmatprep.mubr.f32.mxu1 %v4096_v28 }
 0x18e   :  { %v486_v9 = vpop.f32.mrf.mxu0  ;;  %v921_v36 = vpop.f32.mrf.mxu1 }
 0x18f   :  { %v3434_v63 = vadd.f32 %v907_v17, %v486_v9 }
 0x190   :  { %v495_v45 = vpop.f32.mrf.mxu0  ;;  %v926_v61 = vpop.f32.mrf.mxu1  ;;  %1341 = vmatmul.mubr.f32.gmra.mxu0 %v3146_v23  ;;  %1705 = vmatmul.mubr.f32.gmra.mxu1 %v4134_v49 }
 0x191   :  { %v3439_v2 = vadd.f32 %v912_v39, %v495_v45  ;;  %1346 = vmatprep.mubr.f32.mxu0 %v4096_v28  ;;  %1710 = vmatprep.mubr.f32.mxu1 %v4096_v28  ;;  %v4136_v39 = vand.u32 4294901760, %v3198_v3 }
 0x192   :  { %v497_v6 = vpop.f32.mrf.mxu0  ;;  %v928_v47 = vpop.f32.mrf.mxu1 }
 0x193   :  { %v3443_v59 = vadd.f32 %v914_v60, %v497_v6  ;;  %v4138_v6 = vand.u32 4294901760, %v3223_v32 }
 0x194   :  { %v506_v11 = vpop.f32.mrf.mxu0  ;;  %v933_v21 = vpop.f32.mrf.mxu1  ;;  %1349 = vmatmul.mubr.f32.gmra.mxu0 %v3158_v4  ;;  %1714 = vmatmul.mubr.f32.gmra.mxu1 %v4135_v10 }
 0x195   :  { %v3448_v23 = vadd.f32 %v919_v40, %v506_v11  ;;  %1354 = vmatprep.mubr.f32.mxu0 %v4096_v28  ;;  %1719 = vmatprep.mubr.f32.mxu1 %v4096_v28 }
 0x196   :  { %v508_v13 = vpop.f32.mrf.mxu0  ;;  %v935_v14 = vpop.f32.mrf.mxu1 }
 0x197   :  { %v3452_v16 = vadd.f32 %v921_v36, %v508_v13 }
 0x198   :  { %v517_v17 = vpop.f32.mrf.mxu0  ;;  %v940_v34 = vpop.f32.mrf.mxu1  ;;  %1357 = vmatmul.mubr.f32.gmra.mxu0 %v3166_v1  ;;  %1723 = vmatmul.mubr.f32.gmra.mxu1 %v4136_v39 }
 0x199   :  { %v3457_v4 = vadd.f32 %v926_v61, %v517_v17  ;;  %1362 = vmatprep.mubr.f32.mxu0 %v4096_v28  ;;  %1728 = vmatprep.mubr.f32.mxu1 %v4096_v28 }
 0x19a   :  { %v519_v46 = vpop.f32.mrf.mxu0  ;;  %v942_v53 = vpop.f32.mrf.mxu1 }
 0x19b   :  { %v3461_v60 = vadd.f32 %v928_v47, %v519_v46 }
 0x19c   :  { %v528_v27 = vpop.f32.mrf.mxu0  ;;  %v947_v40 = vpop.f32.mrf.mxu1  ;;  %1365 = vmatmul.mubr.f32.gmra.mxu0 %v3180_v19  ;;  %1732 = vmatmul.mubr.f32.gmra.mxu1 %v4137_v54 }
 0x19d   :  { %v3466_v1 = vadd.f32 %v933_v21, %v528_v27  ;;  %1370 = vmatprep.mubr.f32.mxu0 %v4096_v28  ;;  %1737 = vmatprep.mubr.f32.mxu1 %v4096_v28  ;;  %v4140_v27 = vand.u32 4294901760, %v3247_v37 }
 0x19e   :  { %v530_v9 = vpop.f32.mrf.mxu0  ;;  %v949_v36 = vpop.f32.mrf.mxu1 }
 0x19f   :  { %v3470_v45 = vadd.f32 %v935_v14, %v530_v9  ;;  %v4139_v14 = vand.u32 4294901760, %v3231_v24 }
 0x1a0   :  { %v539_v61 = vpop.f32.mrf.mxu0  ;;  %v954_v49 = vpop.f32.mrf.mxu1  ;;  %1373 = vmatmul.mubr.f32.gmra.mxu0 %v3198_v3  ;;  %1741 = vmatmul.mubr.f32.gmra.mxu1 %v4138_v6  ;;  %v4141_v6 = vand.u32 4294901760, %v3263_v56 }
 0x1a1   :  { %v3475_v19 = vadd.f32 %v940_v34, %v539_v61  ;;  %1378 = vmatprep.mubr.f32.mxu0 %v4096_v28  ;;  %1746 = vmatprep.mubr.f32.mxu1 %v4096_v28 }
 0x1a2   :  { %v541_v47 = vpop.f32.mrf.mxu0  ;;  %v956_v11 = vpop.f32.mrf.mxu1 }
 0x1a3   :  { %v3479_v21 = vadd.f32 %v942_v53, %v541_v47 }
 0x1a4   :  { %v550_v10 = vpop.f32.mrf.mxu0  ;;  %v961_v13 = vpop.f32.mrf.mxu1  ;;  %1381 = vmatmul.mubr.f32.gmra.mxu0 %v3211_v15  ;;  %1750 = vmatmul.mubr.f32.gmra.mxu1 %v4139_v14 }
 0x1a5   :  { %v3484_v3 = vadd.f32 %v947_v40, %v550_v10  ;;  %1386 = vmatprep.mubr.f32.mxu0 %v4096_v28  ;;  %1755 = vmatprep.mubr.f32.mxu1 %v4096_v28 }
 0x1a6   :  { %v552_v17 = vpop.f32.mrf.mxu0  ;;  %v963_v34 = vpop.f32.mrf.mxu1 }
 0x1a7   :  { %v3488_v39 = vadd.f32 %v949_v36, %v552_v17 }
 0x1a8   :  { %v561_v46 = vpop.f32.mrf.mxu0  ;;  %v968_v53 = vpop.f32.mrf.mxu1  ;;  %1389 = vmatmul.mubr.f32.gmra.mxu0 %v3223_v32  ;;  %1759 = vmatmul.mubr.f32.gmra.mxu1 %v4140_v27 }
 0x1a9   :  { %v3493_v15 = vadd.f32 %v954_v49, %v561_v46  ;;  %1394 = vmatprep.mubr.f32.mxu0 %v4096_v28  ;;  %1764 = vmatprep.mubr.f32.mxu1 %v4096_v28 }
 0x1aa   :  { %v563_v40 = vpop.f32.mrf.mxu0  ;;  %v970_v54 = vpop.f32.mrf.mxu1 }
 0x1ab   :  { %v3497_v9 = vadd.f32 %v956_v11, %v563_v40 }
 0x1ac   :  { %v572_v61 = vpop.f32.mrf.mxu0  ;;  %v975_v36 = vpop.f32.mrf.mxu1  ;;  %1397 = vmatmul.mubr.f32.gmra.mxu0 %v3231_v24  ;;  %1768 = vmatmul.mubr.f32.gmra.mxu1 %v4141_v6 }
 0x1ad   :  { %v3502_v32 = vadd.f32 %v961_v13, %v572_v61  ;;  %1402 = vmatprep.mubr.f32.mxu0 %v4096_v28  ;;  %1773 = vmatprep.mubr.f32.mxu1 %v4096_v28 }
 0x1ae   :  { %v574_v49 = vpop.f32.mrf.mxu0  ;;  %v977_v47 = vpop.f32.mrf.mxu1 }
 0x1af   :  { %v3506_v10 = vadd.f32 %v963_v34, %v574_v49 }
 0x1b0   :  { %v583_v14 = vpop.f32.mrf.mxu0  ;;  %v982_v11 = vpop.f32.mrf.mxu1  ;;  %1405 = vmatmul.mubr.f32.gmra.mxu0 %v3247_v37  ;;  %1777 = vmatmul.mubr.f32.gmra.mxu1 %v777_v22 }
 0x1b1   :  { %v3511_v24 = vadd.f32 %v968_v53, %v583_v14  ;;  %1410 = vmatprep.mubr.f32.mxu0 %v4096_v28  ;;  %1782 = vmatprep.mubr.f32.mxu1 %v4096_v28 }
 0x1b2   :  { %v585_v13 = vpop.f32.mrf.mxu0  ;;  %v984_v17 = vpop.f32.mrf.mxu1 }
 0x1b3   :  { %v3515_v46 = vadd.f32 %v970_v54, %v585_v13 }
 0x1b4   :  { %v594_v27 = vpop.f32.mrf.mxu0  ;;  %v989_v34 = vpop.f32.mrf.mxu1  ;;  %1413 = vmatmul.mubr.f32.gmra.mxu0 %v3263_v56  ;;  %1786 = vmatmul.mubr.f32.gmra.mxu1 %v788_v26 }
 0x1b5   :  { %v3520_v37 = vadd.f32 %v975_v36, %v594_v27  ;;  %1418 = vmatprep.mubr.f32.mxu0 %v4096_v28  ;;  %2161 = vmatprep.mubr.f32.mxu1 %v4096_v28 }
 0x1b6   :  { %v596_v22 = vpop.f32.mrf.mxu0  ;;  %v991_v53 = vpop.f32.mrf.mxu1 }
 0x1b7   :  { %v3524_v40 = vadd.f32 %v977_v47, %v596_v22 }
 0x1b8   :  { %v605_v61 = vpop.f32.mrf.mxu0  ;;  %v996_v54 = vpop.f32.mrf.mxu1  ;;  %1421 = vmatmul.mubr.f32.gmra.mxu0 %v3273_v50  ;;  %2163 = vmatmul.mubr.f32.vlgmr.msra.gmra.mxu1 %v2864_v33 }
 0x1b9   :  { %v3528_v56 = vadd.f32 %v982_v11, %v605_v61  ;;  %1426 = vmatprep.mubr.f32.mxu0 %v4096_v28  ;;  %2168 = vmatprep.mubr.f32.mxu1 %v4096_v28 }
 0x1ba   :  { %v607_v26 = vpop.f32.mrf.mxu0  ;;  %v998_v36 = vpop.f32.mrf.mxu1 }
 0x1bb   :  { %v3532_v6 = vadd.f32 %v984_v17, %v607_v26 }
 0x1bc   :  { %v616_v49 = vpop.f32.mrf.mxu0  ;;  %v1003_v14 = vpop.f32.mrf.mxu1  ;;  %1429 = vmatmul.mubr.f32.gmra.mxu0 %v3285_v52  ;;  %2170 = vmatmul.mubr.f32.gmra.mxu1 %v2874_v38 }
 0x1bd   :  { %v3536_v47 = vadd.f32 %v989_v34, %v616_v49  ;;  %1868 = vmatprep.mubr.f32.mxu0 %v4096_v28  ;;  %2175 = vmatprep.mubr.f32.mxu1 %v4096_v28 }
 0x1be   :  { %v618_v50 = vpop.f32.mrf.mxu0  ;;  %v1005_v11 = vpop.f32.mrf.mxu1 }
 0x1bf   :  { %v3540_v13 = vadd.f32 %v991_v53, %v618_v50 }
 0x1c0   :  { %v627_v27 = vpop.f32.mrf.mxu0  ;;  %v1010_v22 = vpop.f32.mrf.mxu1  ;;  %1870 = vmatmul.mubr.f32.vlgmr.msra.gmra.mxu0 %v2864_v33  ;;  %2177 = vmatmul.mubr.f32.gmra.mxu1 %v2888_v44 }
 0x1c1   :  { %v3544_v17 = vadd.f32 %v996_v54, %v627_v27  ;;  %1875 = vmatprep.mubr.f32.mxu0 %v4096_v28  ;;  %2182 = vmatprep.mubr.f32.mxu1 %v4096_v28 }
 0x1c2   :  { %v629_v52 = vpop.f32.mrf.mxu0  ;;  %v1012_v34 = vpop.f32.mrf.mxu1 }
 0x1c3   :  { %4142 = vst [vmem:[#allocation37_spill] sm:$0xff] %v3544_v17  ;;  %v3548_v61 = vadd.f32 %v998_v36, %v629_v52 }
 0x1c4   :  { %v638_v26 = vpop.f32.mrf.mxu0  ;;  %v1017_v49 = vpop.f32.mrf.mxu1  ;;  %1877 = vmatmul.mubr.f32.gmra.mxu0 %v2874_v38  ;;  %2184 = vmatmul.mubr.f32.gmra.mxu1 %v2901_v51 }
 0x1c5   :  { %v3552_v53 = vadd.f32 %v1003_v14, %v638_v26  ;;  %1882 = vmatprep.mubr.f32.mxu0 %v4096_v28  ;;  %2189 = vmatprep.mubr.f32.mxu1 %v4096_v28 }
 0x1c6   :  { %v640_v33 = vpop.f32.mrf.mxu0  ;;  %v1019_v54 = vpop.f32.mrf.mxu1 }
 0x1c7   :  { %4143 = vst [vmem:[#allocation38_spill] sm:$0xff] %v3552_v53  ;;  %v3556_v50 = vadd.f32 %v1005_v11, %v640_v33 }
 0x1c8   :  { %v649_v27 = vpop.f32.mrf.mxu0  ;;  %v1024_v17 = vpop.f32.mrf.mxu1  ;;  %1884 = vmatmul.mubr.f32.gmra.mxu0 %v2888_v44  ;;  %2191 = vmatmul.mubr.f32.gmra.mxu1 %v2917_v58 }
 0x1c9   :  { %v3560_v36 = vadd.f32 %v1010_v22, %v649_v27  ;;  %1889 = vmatprep.mubr.f32.mxu0 %v4096_v28  ;;  %2196 = vmatprep.mubr.f32.mxu1 %v4096_v28 }
 0x1ca   :  { %v651_v38 = vpop.f32.mrf.mxu0  ;;  %v1026_v14 = vpop.f32.mrf.mxu1 }
 0x1cb   :  { %4144 = vst [vmem:[#allocation39_spill] sm:$0xff] %v3560_v36  ;;  %v3564_v52 = vadd.f32 %v1012_v34, %v651_v38 }
 0x1cc   :  { %v660_v26 = vpop.f32.mrf.mxu0  ;;  %v1031_v53 = vpop.f32.mrf.mxu1  ;;  %1891 = vmatmul.mubr.f32.gmra.mxu0 %v2901_v51  ;;  %2198 = vmatmul.mubr.f32.gmra.mxu1 %v2932_v7 }
 0x1cd   :  { %v3568_v11 = vadd.f32 %v1017_v49, %v660_v26  ;;  %1896 = vmatprep.mubr.f32.mxu0 %v4096_v28  ;;  %2203 = vmatprep.mubr.f32.mxu1 %v4096_v28 }
 0x1ce   :  { %v662_v44 = vpop.f32.mrf.mxu0  ;;  %v1033_v22 = vpop.f32.mrf.mxu1 }
 0x1cf   :  { %4145 = vst [vmem:[#allocation40_spill] sm:$0xff] %v3568_v11  ;;  %v3572_v33 = vadd.f32 %v1019_v54, %v662_v44 }
 0x1d0   :  { %v671_v27 = vpop.f32.mrf.mxu0  ;;  %v1038_v36 = vpop.f32.mrf.mxu1  ;;  %1898 = vmatmul.mubr.f32.gmra.mxu0 %v2917_v58  ;;  %2205 = vmatmul.mubr.f32.gmra.mxu1 %v2947_v25 }
 0x1d1   :  { %v3576_v34 = vadd.f32 %v1024_v17, %v671_v27  ;;  %1903 = vmatprep.mubr.f32.mxu0 %v4096_v28  ;;  %2210 = vmatprep.mubr.f32.mxu1 %v4096_v28 }
 0x1d2   :  { %v673_v51 = vpop.f32.mrf.mxu0  ;;  %v1040_v49 = vpop.f32.mrf.mxu1 }
 0x1d3   :  { %4146 = vst [vmem:[#allocation41_spill] sm:$0xff] %v3576_v34  ;;  %v3580_v38 = vadd.f32 %v1026_v14, %v673_v51 }
 0x1d4   :  { %v682_v26 = vpop.f32.mrf.mxu0  ;;  %v1045_v11 = vpop.f32.mrf.mxu1  ;;  %1905 = vmatmul.mubr.f32.gmra.mxu0 %v2932_v7  ;;  %2212 = vmatmul.mubr.f32.gmra.mxu1 %v2962_v35 }
 0x1d5   :  { %v3584_v54 = vadd.f32 %v1031_v53, %v682_v26  ;;  %1910 = vmatprep.mubr.f32.mxu0 %v4096_v28  ;;  %2217 = vmatprep.mubr.f32.mxu1 %v4096_v28 }
 0x1d6   :  { %v684_v58 = vpop.f32.mrf.mxu0  ;;  %v1047_v17 = vpop.f32.mrf.mxu1 }
 0x1d7   :  { %4147 = vst [vmem:[#allocation42_spill] sm:$0xff] %v3584_v54  ;;  %v3588_v44 = vadd.f32 %v1033_v22, %v684_v58 }
 0x1d8   :  { %v693_v27 = vpop.f32.mrf.mxu0  ;;  %v1052_v34 = vpop.f32.mrf.mxu1  ;;  %1912 = vmatmul.mubr.f32.gmra.mxu0 %v2947_v25  ;;  %2219 = vmatmul.mubr.f32.gmra.mxu1 %v2975_v48 }
 0x1d9   :  { %v3592_v14 = vadd.f32 %v1038_v36, %v693_v27  ;;  %1917 = vmatprep.mubr.f32.mxu0 %v4096_v28  ;;  %2224 = vmatprep.mubr.f32.mxu1 %v4096_v28 }
 0x1da   :  { %v695_v7 = vpop.f32.mrf.mxu0  ;;  %v1054_v53 = vpop.f32.mrf.mxu1 }
 0x1db   :  { %4148 = vst [vmem:[#allocation43_spill] sm:$0xff] %v3592_v14  ;;  %v3596_v51 = vadd.f32 %v1040_v49, %v695_v7 }
 0x1dc   :  { %v704_v26 = vpop.f32.mrf.mxu0  ;;  %v1059_v54 = vpop.f32.mrf.mxu1  ;;  %1919 = vmatmul.mubr.f32.gmra.mxu0 %v2962_v35  ;;  %2226 = vmatmul.mubr.f32.gmra.mxu1 %v2990_v62 }
 0x1dd   :  { %v3600_v22 = vadd.f32 %v1045_v11, %v704_v26  ;;  %1924 = vmatprep.mubr.f32.mxu0 %v4096_v28  ;;  %2231 = vmatprep.mubr.f32.mxu1 %v4096_v28 }
 0x1de   :  { %v706_v25 = vpop.f32.mrf.mxu0  ;;  %v1061_v36 = vpop.f32.mrf.mxu1 }
 0x1df   :  { %4149 = vst [vmem:[#allocation44_spill] sm:$0xff] %v3600_v22  ;;  %v3604_v58 = vadd.f32 %v1047_v17, %v706_v25 }
 0x1e0   :  { %v715_v27 = vpop.f32.mrf.mxu0  ;;  %v1066_v14 = vpop.f32.mrf.mxu1  ;;  %1926 = vmatmul.mubr.f32.gmra.mxu0 %v2975_v48  ;;  %2233 = vmatmul.mubr.f32.gmra.mxu1 %v3005_v29 }
 0x1e1   :  { %v3608_v49 = vadd.f32 %v1052_v34, %v715_v27  ;;  %1931 = vmatprep.mubr.f32.mxu0 %v4096_v28  ;;  %2238 = vmatprep.mubr.f32.mxu1 %v4096_v28 }
 0x1e2   :  { %v717_v35 = vpop.f32.mrf.mxu0  ;;  %v1068_v11 = vpop.f32.mrf.mxu1 }
 0x1e3   :  { %4150 = vst [vmem:[#allocation45_spill] sm:$0xff] %v3608_v49  ;;  %v3612_v7 = vadd.f32 %v1054_v53, %v717_v35 }
 0x1e4   :  { %v726_v26 = vpop.f32.mrf.mxu0  ;;  %v1073_v22 = vpop.f32.mrf.mxu1  ;;  %1933 = vmatmul.mubr.f32.gmra.mxu0 %v2990_v62  ;;  %2240 = vmatmul.mubr.f32.gmra.mxu1 %v3018_v55 }
 0x1e5   :  { %v3616_v17 = vadd.f32 %v1059_v54, %v726_v26  ;;  %1938 = vmatprep.mubr.f32.mxu0 %v4096_v28  ;;  %2245 = vmatprep.mubr.f32.mxu1 %v4096_v28 }
 0x1e6   :  { %v728_v48 = vpop.f32.mrf.mxu0  ;;  %v1075_v34 = vpop.f32.mrf.mxu1 }
 0x1e7   :  { %4151 = vst [vmem:[#allocation46_spill] sm:$0xff] %v3616_v17  ;;  %v3620_v25 = vadd.f32 %v1061_v36, %v728_v48  ;;  %v4155_v36 = vld [vmem:[#allocation22_spill] sm:$0xff] }
 0x1e8   :  { %v737_v27 = vpop.f32.mrf.mxu0  ;;  %v1080_v49 = vpop.f32.mrf.mxu1  ;;  %1940 = vmatmul.mubr.f32.gmra.mxu0 %v3005_v29  ;;  %2247 = vmatmul.mubr.f32.gmra.mxu1 %v3033_v41 }
 0x1e9   :  { %4152 = vst [vmem:[#allocation47_spill] sm:$0xff] %v3620_v25  ;;  %v3624_v53 = vadd.f32 %v1066_v14, %v737_v27  ;;  %1945 = vmatprep.mubr.f32.mxu0 %v4096_v28  ;;  %2252 = vmatprep.mubr.f32.mxu1 %v4096_v28 }
 0x1ea   :  { %v739_v62 = vpop.f32.mrf.mxu0  ;;  %v1082_v54 = vpop.f32.mrf.mxu1 }
 0x1eb   :  { %4153 = vst [vmem:[#allocation48_spill] sm:$0xff] %v3624_v53  ;;  %v3628_v35 = vadd.f32 %v1068_v11, %v739_v62  ;;  %v4158_v11 = vld [vmem:[#allocation24_spill] sm:$0xff] }
 0x1ec   :  { %v748_v26 = vpop.f32.mrf.mxu0  ;;  %v1087_v17 = vpop.f32.mrf.mxu1  ;;  %1947 = vmatmul.mubr.f32.gmra.mxu0 %v3018_v55  ;;  %2254 = vmatmul.mubr.f32.gmra.mxu1 %v4155_v36 }
 0x1ed   :  { %4154 = vst [vmem:[#allocation49_spill] sm:$0xff] %v3628_v35  ;;  %v3632_v48 = vadd.f32 %v1073_v22, %v748_v26  ;;  %1952 = vmatprep.mubr.f32.mxu0 %v4096_v28  ;;  %2259 = vmatprep.mubr.f32.mxu1 %v4096_v28 }
 0x1ee   :  { %v750_v29 = vpop.f32.mrf.mxu0  ;;  %v1089_v14 = vpop.f32.mrf.mxu1 }
 0x1ef   :  { %4156 = vst [vmem:[#allocation22_spill] sm:$0xff] %v3632_v48  ;;  %v3636_v27 = vadd.f32 %v1075_v34, %v750_v29  ;;  %v4161_v34 = vld [vmem:[#allocation26_spill] sm:$0xff] }
 0x1f0   :  { %v759_v53 = vpop.f32.mrf.mxu0  ;;  %v1094_v25 = vpop.f32.mrf.mxu1  ;;  %1954 = vmatmul.mubr.f32.gmra.mxu0 %v3033_v41  ;;  %2261 = vmatmul.mubr.f32.gmra.mxu1 %v4158_v11 }
 0x1f1   :  { %4157 = vst [vmem:[#allocation50_spill] sm:$0xff] %v3636_v27  ;;  %v3640_v62 = vadd.f32 %v1080_v49, %v759_v53  ;;  %1959 = vmatprep.mubr.f32.mxu0 %v4096_v28  ;;  %2266 = vmatprep.mubr.f32.mxu1 %v4096_v28 }
 0x1f2   :  { %v761_v55 = vpop.f32.mrf.mxu0  ;;  %v1096_v22 = vpop.f32.mrf.mxu1 }
 0x1f3   :  { %4159 = vst [vmem:[#allocation24_spill] sm:$0xff] %v3640_v62  ;;  %v3644_v26 = vadd.f32 %v1082_v54, %v761_v55  ;;  %v4164_v54 = vld [vmem:[#allocation23_spill] sm:$0xff] }
 0x1f4   :  { %v770_v48 = vpop.f32.mrf.mxu0  ;;  %v1101_v35 = vpop.f32.mrf.mxu1  ;;  %1961 = vmatmul.mubr.f32.gmra.mxu0 %v4155_v36  ;;  %2268 = vmatmul.mubr.f32.gmra.mxu1 %v4161_v34 }
 0x1f5   :  { %4160 = vst [vmem:[#allocation51_spill] sm:$0xff] %v3644_v26  ;;  %v3648_v29 = vadd.f32 %v1087_v17, %v770_v48  ;;  %1966 = vmatprep.mubr.f32.mxu0 %v4096_v28  ;;  %2273 = vmatprep.mubr.f32.mxu1 %v4096_v28 }
 0x1f6   :  { %v772_v41 = vpop.f32.mrf.mxu0  ;;  %v1103_v49 = vpop.f32.mrf.mxu1 }
 0x1f7   :  { %4162 = vst [vmem:[#allocation26_spill] sm:$0xff] %v3648_v29  ;;  %v3652_v53 = vadd.f32 %v1089_v14, %v772_v41  ;;  %v4167_v14 = vld [vmem:[#allocation25_spill] sm:$0xff] }
 0x1f8   :  { %v781_v62 = vpop.f32.mrf.mxu0  ;;  %v1508_v27 = vpop.f32.mrf.mxu1  ;;  %1968 = vmatmul.mubr.f32.gmra.mxu0 %v4158_v11  ;;  %2275 = vmatmul.mubr.f32.gmra.mxu1 %v4164_v54 }
 0x1f9   :  { %4163 = vst [vmem:[#allocation52_spill] sm:$0xff] %v3652_v53  ;;  %v3656_v55 = vadd.f32 %v1094_v25, %v781_v62  ;;  %1973 = vmatprep.mubr.f32.mxu0 %v4096_v28  ;;  %2280 = vmatprep.mubr.f32.mxu1 %v4096_v28 }
 0x1fa   :  { %v783_v17 = vpop.f32.mrf.mxu0  ;;  %v1510_v36 = vpop.f32.mrf.mxu1 }
 0x1fb   :  { %4165 = vst [vmem:[#allocation23_spill] sm:$0xff] %v3656_v55  ;;  %v3660_v48 = vadd.f32 %v1096_v22, %v783_v17  ;;  %v4170_v22 = vld [vmem:[#allocation27_spill] sm:$0xff] }
 0x1fc   :  { %v792_v29 = vpop.f32.mrf.mxu0  ;;  %v1517_v26 = vpop.f32.mrf.mxu1  ;;  %1975 = vmatmul.mubr.f32.gmra.mxu0 %v4161_v34  ;;  %2282 = vmatmul.mubr.f32.gmra.mxu1 %v4167_v14 }
 0x1fd   :  { %4166 = vst [vmem:[#allocation53_spill] sm:$0xff] %v3660_v48  ;;  %v3664_v41 = vadd.f32 %v1101_v35, %v792_v29  ;;  %1980 = vmatprep.mubr.f32.mxu0 %v4096_v28  ;;  %2287 = vmatprep.mubr.f32.mxu1 %v4096_v28 }
 0x1fe   :  { %v794_v25 = vpop.f32.mrf.mxu0  ;;  %v1519_v11 = vpop.f32.mrf.mxu1 }
 0x1ff   :  { %4168 = vst [vmem:[#allocation25_spill] sm:$0xff] %v3664_v41  ;;  %v3668_v62 = vadd.f32 %v1103_v49, %v794_v25 }
 0x200   :  { %v1182_v55 = vpop.f32.mrf.mxu0  ;;  %v1526_v53 = vpop.f32.mrf.mxu1  ;;  %1982 = vmatmul.mubr.f32.gmra.mxu0 %v4164_v54  ;;  %2289 = vmatmul.mubr.f32.gmra.mxu1 %v4170_v22 }
 0x201   :  { %4169 = vst [vmem:[#allocation54_spill] sm:$0xff] %v3668_v62  ;;  %v1183_v34 = vadd.f32 %v1182_v55, %v3403_v5  ;;  %1987 = vmatprep.mubr.f32.mxu0 %v4096_v28  ;;  %2294 = vmatprep.mubr.f32.mxu1 %v4096_v28  ;;  %v4171_v62 = vld [vmem:[#allocation28_spill] sm:$0xff] }
 0x202   :  { %v1184_v35 = vpop.f32.mrf.mxu0  ;;  %v1528_v29 = vpop.f32.mrf.mxu1 }
 0x203   :  { %v1185_v17 = vadd.f32 %v1184_v35, %v3407_v30  ;;  %v3676_v41 = vadd.f32 %v1508_v27, %v1183_v34 }
 0x204   :  { %v1190_v49 = vpop.f32.mrf.mxu0  ;;  %v1535_v25 = vpop.f32.mrf.mxu1  ;;  %1989 = vmatmul.mubr.f32.gmra.mxu0 %v4167_v14  ;;  %2296 = vmatmul.mubr.f32.gmra.mxu1 %v4171_v62  ;;  %v4172_v14 = vld [vmem:[#allocation29_spill] sm:$0xff] }
 0x205   :  { %v1191_v54 = vadd.f32 %v1190_v49, %v3412_v57  ;;  %1994 = vmatprep.mubr.f32.mxu0 %v4096_v28  ;;  %2301 = vmatprep.mubr.f32.mxu1 %v4096_v28  ;;  %v3683_v5 = vadd.f32 %v1510_v36, %v1185_v17 }
 0x206   :  { %v1192_v55 = vpop.f32.mrf.mxu0  ;;  %v1537_v48 = vpop.f32.mrf.mxu1 }
 0x207   :  { %v1193_v30 = vadd.f32 %v1192_v55, %v3416_v18  ;;  %v3686_v27 = vadd.f32 %v1517_v26, %v1191_v54 }
 0x208   :  { %v1198_v34 = vpop.f32.mrf.mxu0  ;;  %v1544_v35 = vpop.f32.mrf.mxu1  ;;  %1996 = vmatmul.mubr.f32.gmra.mxu0 %v4170_v22  ;;  %2303 = vmatmul.mubr.f32.gmra.mxu1 %v4172_v14  ;;  %v4173_v22 = vld [vmem:[#allocation30_spill] sm:$0xff] }
 0x209   :  { %v1199_v57 = vadd.f32 %v1198_v34, %v3421_v20  ;;  %2001 = vmatprep.mubr.f32.mxu0 %v4096_v28  ;;  %2308 = vmatprep.mubr.f32.mxu1 %v4096_v28  ;;  %v3693_v36 = vadd.f32 %v1519_v11, %v1193_v30 }
 0x20a   :  { %v1200_v17 = vpop.f32.mrf.mxu0  ;;  %v1546_v49 = vpop.f32.mrf.mxu1 }
 0x20b   :  { %v1201_v18 = vadd.f32 %v1200_v17, %v3425_v12  ;;  %v3696_v26 = vadd.f32 %v1526_v53, %v1199_v57 }
 0x20c   :  { %v1206_v54 = vpop.f32.mrf.mxu0  ;;  %v1553_v55 = vpop.f32.mrf.mxu1  ;;  %2003 = vmatmul.mubr.f32.gmra.mxu0 %v4171_v62  ;;  %2310 = vmatmul.mubr.f32.gmra.mxu1 %v4173_v22  ;;  %v4174_v62 = vld [vmem:[#allocation31_spill] sm:$0xff] }
 0x20d   :  { %v1207_v20 = vadd.f32 %v1206_v54, %v3430_v43  ;;  %2008 = vmatprep.mubr.f32.mxu0 %v4096_v28  ;;  %2315 = vmatprep.mubr.f32.mxu1 %v4096_v28  ;;  %v3703_v11 = vadd.f32 %v1528_v29, %v1201_v18 }
 0x20e   :  { %v1208_v30 = vpop.f32.mrf.mxu0  ;;  %v1555_v34 = vpop.f32.mrf.mxu1 }
 0x20f   :  { %v1209_v12 = vadd.f32 %v1208_v30, %v3434_v63  ;;  %v3706_v53 = vadd.f32 %v1535_v25, %v1207_v20 }
 0x210   :  { %v1214_v57 = vpop.f32.mrf.mxu0  ;;  %v1562_v17 = vpop.f32.mrf.mxu1  ;;  %2010 = vmatmul.mubr.f32.gmra.mxu0 %v4172_v14  ;;  %2317 = vmatmul.mubr.f32.gmra.mxu1 %v4174_v62  ;;  %v4175_v14 = vld [vmem:[#allocation32_spill] sm:$0xff] }
 0x211   :  { %v1215_v43 = vadd.f32 %v1214_v57, %v3439_v2  ;;  %2015 = vmatprep.mubr.f32.mxu0 %v4096_v28  ;;  %2322 = vmatprep.mubr.f32.mxu1 %v4096_v28  ;;  %v3713_v29 = vadd.f32 %v1537_v48, %v1209_v12 }
 0x212   :  { %v1216_v18 = vpop.f32.mrf.mxu0  ;;  %v1564_v54 = vpop.f32.mrf.mxu1 }
 0x213   :  { %v1217_v63 = vadd.f32 %v1216_v18, %v3443_v59  ;;  %v3716_v25 = vadd.f32 %v1544_v35, %v1215_v43 }
 0x214   :  { %v1222_v20 = vpop.f32.mrf.mxu0  ;;  %v1571_v30 = vpop.f32.mrf.mxu1  ;;  %2017 = vmatmul.mubr.f32.gmra.mxu0 %v4173_v22  ;;  %2324 = vmatmul.mubr.f32.gmra.mxu1 %v4175_v14  ;;  %v4176_v22 = vld [vmem:[#allocation33_spill] sm:$0xff] }
 0x215   :  { %v1223_v2 = vadd.f32 %v1222_v20, %v3448_v23  ;;  %2022 = vmatprep.mubr.f32.mxu0 %v4096_v28  ;;  %2329 = vmatprep.mubr.f32.mxu1 %v4096_v28  ;;  %v3723_v48 = vadd.f32 %v1546_v49, %v1217_v63 }
 0x216   :  { %v1224_v12 = vpop.f32.mrf.mxu0  ;;  %v1573_v57 = vpop.f32.mrf.mxu1 }
 0x217   :  { %v1225_v59 = vadd.f32 %v1224_v12, %v3452_v16  ;;  %v3726_v35 = vadd.f32 %v1553_v55, %v1223_v2 }
 0x218   :  { %v1230_v43 = vpop.f32.mrf.mxu0  ;;  %v1580_v18 = vpop.f32.mrf.mxu1  ;;  %2024 = vmatmul.mubr.f32.gmra.mxu0 %v4174_v62  ;;  %2331 = vmatmul.mubr.f32.gmra.mxu1 %v4176_v22  ;;  %v4177_v62 = vld [vmem:[#allocation34_spill] sm:$0xff] }
 0x219   :  { %v1231_v23 = vadd.f32 %v1230_v43, %v3457_v4  ;;  %2029 = vmatprep.mubr.f32.mxu0 %v4096_v28  ;;  %2336 = vmatprep.mubr.f32.mxu1 %v4096_v28  ;;  %v3733_v49 = vadd.f32 %v1555_v34, %v1225_v59 }
 0x21a   :  { %v1232_v63 = vpop.f32.mrf.mxu0  ;;  %v1582_v20 = vpop.f32.mrf.mxu1 }
 0x21b   :  { %v1233_v16 = vadd.f32 %v1232_v63, %v3461_v60  ;;  %v3736_v55 = vadd.f32 %v1562_v17, %v1231_v23 }
 0x21c   :  { %v1238_v2 = vpop.f32.mrf.mxu0  ;;  %v1589_v12 = vpop.f32.mrf.mxu1  ;;  %2031 = vmatmul.mubr.f32.gmra.mxu0 %v4175_v14  ;;  %2338 = vmatmul.mubr.f32.gmra.mxu1 %v4177_v62  ;;  %v4178_v14 = vld [vmem:[#allocation35_spill] sm:$0xff] }
 0x21d   :  { %v1239_v4 = vadd.f32 %v1238_v2, %v3466_v1  ;;  %2036 = vmatprep.mubr.f32.mxu0 %v4096_v28  ;;  %2343 = vmatprep.mubr.f32.mxu1 %v4096_v28  ;;  %v3743_v34 = vadd.f32 %v1564_v54, %v1233_v16 }
 0x21e   :  { %v1240_v59 = vpop.f32.mrf.mxu0  ;;  %v1591_v43 = vpop.f32.mrf.mxu1 }
 0x21f   :  { %v1241_v60 = vadd.f32 %v1240_v59, %v3470_v45  ;;  %v3746_v17 = vadd.f32 %v1571_v30, %v1239_v4 }
 0x220   :  { %v1246_v23 = vpop.f32.mrf.mxu0  ;;  %v1598_v63 = vpop.f32.mrf.mxu1  ;;  %2038 = vmatmul.mubr.f32.gmra.mxu0 %v4176_v22  ;;  %2345 = vmatmul.mubr.f32.gmra.mxu1 %v4178_v14  ;;  %v4179_v22 = vld [vmem:[#allocation36_spill] sm:$0xff] }
 0x221   :  { %v1247_v1 = vadd.f32 %v1246_v23, %v3475_v19  ;;  %2043 = vmatprep.mubr.f32.mxu0 %v4096_v28  ;;  %2350 = vmatprep.mubr.f32.mxu1 %v4096_v28  ;;  %v3753_v54 = vadd.f32 %v1573_v57, %v1241_v60 }
 0x222   :  { %v1248_v16 = vpop.f32.mrf.mxu0  ;;  %v1600_v2 = vpop.f32.mrf.mxu1 }
 0x223   :  { %v1249_v45 = vadd.f32 %v1248_v16, %v3479_v21  ;;  %v3756_v30 = vadd.f32 %v1580_v18, %v1247_v1 }
 0x224   :  { %v1254_v4 = vpop.f32.mrf.mxu0  ;;  %v1607_v59 = vpop.f32.mrf.mxu1  ;;  %2045 = vmatmul.mubr.f32.gmra.mxu0 %v4177_v62  ;;  %2352 = vmatmul.mubr.f32.gmra.mxu1 %v4179_v22 }
 0x225   :  { %v1255_v19 = vadd.f32 %v1254_v4, %v3484_v3  ;;  %2050 = vmatprep.mubr.f32.mxu0 %v4096_v28  ;;  %2357 = vmatprep.mubr.f32.mxu1 %v4096_v28  ;;  %v3763_v57 = vadd.f32 %v1582_v20, %v1249_v45 }
 0x226   :  { %v1256_v60 = vpop.f32.mrf.mxu0  ;;  %v1609_v23 = vpop.f32.mrf.mxu1 }
 0x227   :  { %v1257_v21 = vadd.f32 %v1256_v60, %v3488_v39  ;;  %v3766_v18 = vadd.f32 %v1589_v12, %v1255_v19 }
 0x228   :  { %v1262_v1 = vpop.f32.mrf.mxu0  ;;  %v1616_v16 = vpop.f32.mrf.mxu1  ;;  %2052 = vmatmul.mubr.f32.gmra.mxu0 %v4178_v14  ;;  %2359 = vmatmul.mubr.f32.gmra.mxu1 %v3236_v8 }
 0x229   :  { %v1263_v3 = vadd.f32 %v1262_v1, %v3493_v15  ;;  %2057 = vmatprep.mubr.f32.mxu0 %v4096_v28  ;;  %2364 = vmatprep.mubr.f32.mxu1 %v4096_v28  ;;  %v3773_v20 = vadd.f32 %v1591_v43, %v1257_v21 }
 0x22a   :  { %v1264_v62 = vpop.f32.mrf.mxu0  ;;  %v1618_v45 = vpop.f32.mrf.mxu1 }
 0x22b   :  { %v1265_v39 = vadd.f32 %v1264_v62, %v3497_v9  ;;  %v3776_v12 = vadd.f32 %v1598_v63, %v1263_v3 }
 0x22c   :  { %v1270_v4 = vpop.f32.mrf.mxu0  ;;  %v1625_v19 = vpop.f32.mrf.mxu1  ;;  %2059 = vmatmul.mubr.f32.gmra.mxu0 %v4179_v22  ;;  %2366 = vmatmul.mubr.f32.gmra.mxu1 %v3249_v0 }
 0x22d   :  { %v1271_v15 = vadd.f32 %v1270_v4, %v3502_v32  ;;  %2064 = vmatprep.mubr.f32.mxu0 %v4096_v28  ;;  %2371 = vmatprep.mubr.f32.mxu1 %v4096_v28  ;;  %v3783_v43 = vadd.f32 %v1600_v2, %v1265_v39 }
 0x22e   :  { %v1272_v14 = vpop.f32.mrf.mxu0  ;;  %v1627_v60 = vpop.f32.mrf.mxu1 }
 0x22f   :  { %v1273_v9 = vadd.f32 %v1272_v14, %v3506_v10  ;;  %v3786_v63 = vadd.f32 %v1607_v59, %v1271_v15 }
 0x230   :  { %v1278_v21 = vpop.f32.mrf.mxu0  ;;  %v1634_v1 = vpop.f32.mrf.mxu1  ;;  %2066 = vmatmul.mubr.f32.gmra.mxu0 %v3236_v8  ;;  %2373 = vmatmul.mubr.f32.gmra.mxu1 %v3265_v42 }
 0x231   :  { %v1279_v32 = vadd.f32 %v1278_v21, %v3511_v24  ;;  %2071 = vmatprep.mubr.f32.mxu0 %v4096_v28  ;;  %2378 = vmatprep.mubr.f32.mxu1 %v4096_v28  ;;  %v3793_v2 = vadd.f32 %v1609_v23, %v1273_v9 }
 0x232   :  { %v1280_v22 = vpop.f32.mrf.mxu0  ;;  %v1636_v3 = vpop.f32.mrf.mxu1 }
 0x233   :  { %v1281_v10 = vadd.f32 %v1280_v22, %v3515_v46  ;;  %v3796_v59 = vadd.f32 %v1616_v16, %v1279_v32 }
 0x234   :  { %v1286_v62 = vpop.f32.mrf.mxu0  ;;  %v1643_v39 = vpop.f32.mrf.mxu1  ;;  %2073 = vmatmul.mubr.f32.gmra.mxu0 %v3249_v0  ;;  %2380 = vmatmul.mubr.f32.gmra.mxu1 %v3275_v31 }
 0x235   :  { %v1287_v8 = vadd.f32 %v1286_v62, %v3520_v37  ;;  %2078 = vmatprep.mubr.f32.mxu0 %v4096_v28  ;;  %v3802_v24 = vadd.f32 %v1618_v45, %v1281_v10 }
 0x236   :  { %v1288_v23 = vpop.f32.mrf.mxu0  ;;  %v1645_v4 = vpop.f32.mrf.mxu1 }
 0x237   :  { %v1289_v15 = vadd.f32 %v1288_v23, %v3524_v40  ;;  %v3805_v14 = vadd.f32 %v1625_v19, %v1287_v8  ;;  %v4180_v23 = vld [vmem:[#allocation37_spill] sm:$0xff] }
 0x238   :  { %v1294_v46 = vpop.f32.mrf.mxu0  ;;  %v1652_v16 = vpop.f32.mrf.mxu1  ;;  %2080 = vmatmul.mubr.f32.gmra.mxu0 %v3265_v42 }
 0x239   :  { %v1295_v0 = vadd.f32 %v1294_v46, %v3528_v56  ;;  %2085 = vmatprep.mubr.f32.mxu0 %v4096_v28  ;;  %v3810_v9 = vadd.f32 %v1627_v60, %v1289_v15 }
 0x23a   :  { %v1296_v37 = vpop.f32.mrf.mxu0  ;;  %v1654_v21 = vpop.f32.mrf.mxu1 }
 0x23b   :  { %v1297_v45 = vadd.f32 %v1296_v37, %v3532_v6  ;;  %v3813_v32 = vadd.f32 %v1634_v1, %v1295_v0  ;;  %v4182_v37 = vld [vmem:[#allocation38_spill] sm:$0xff] }
 0x23c   :  { %v1302_v22 = vpop.f32.mrf.mxu0  ;;  %v1661_v40 = vpop.f32.mrf.mxu1  ;;  %2087 = vmatmul.mubr.f32.gmra.mxu0 %v3275_v31 }
 0x23d   :  { %v1303_v19 = vadd.f32 %v1302_v22, %v3536_v47  ;;  %v3817_v10 = vadd.f32 %v1636_v3, %v1297_v45 }
 0x23e   :  { %v1304_v42 = vpop.f32.mrf.mxu0  ;;  %v1663_v56 = vpop.f32.mrf.mxu1 }
 0x23f   :  { %v1305_v28 = vadd.f32 %v1304_v42, %v3540_v13  ;;  %v3820_v60 = vadd.f32 %v1643_v39, %v1303_v19 }
 0x240   :  { %v1310_v62 = vpop.f32.mrf.mxu0  ;;  %v1670_v8 = vpop.f32.mrf.mxu1 }
 0x241   :  { %v1311_v6 = vadd.f32 %v1310_v62, %v4180_v23  ;;  %v3823_v1 = vadd.f32 %v1645_v4, %v1305_v28  ;;  %v4184_v62 = vld [vmem:[#allocation39_spill] sm:$0xff] }
 0x242   :  { %v1312_v15 = vpop.f32.mrf.mxu0  ;;  %v1672_v46 = vpop.f32.mrf.mxu1 }
 0x243   :  { %4181 = vst [vmem:[#allocation27_spill] sm:$0xff] %v3823_v1  ;;  %v1313_v31 = vadd.f32 %v1312_v15, %v3548_v61  ;;  %v3826_v0 = vadd.f32 %v1652_v16, %v1311_v6 }
 0x244   :  { %v1318_v47 = vpop.f32.mrf.mxu0  ;;  %v1679_v3 = vpop.f32.mrf.mxu1 }
 0x245   :  { %v1319_v45 = vadd.f32 %v1318_v47, %v4182_v37  ;;  %v3829_v22 = vadd.f32 %v1654_v21, %v1313_v31  ;;  %v4186_v47 = vld [vmem:[#allocation40_spill] sm:$0xff] }
 0x246   :  { %v1320_v13 = vpop.f32.mrf.mxu0  ;;  %v1681_v39 = vpop.f32.mrf.mxu1 }
 0x247   :  { %4183 = vst [vmem:[#allocation28_spill] sm:$0xff] %v3829_v22  ;;  %v1321_v19 = vadd.f32 %v1320_v13, %v3556_v50  ;;  %v3832_v42 = vadd.f32 %v1661_v40, %v1319_v45 }
 0x248   :  { %v1326_v4 = vpop.f32.mrf.mxu0  ;;  %v1688_v28 = vpop.f32.mrf.mxu1 }
 0x249   :  { %v1327_v23 = vadd.f32 %v1326_v4, %v4184_v62  ;;  %v3835_v1 = vadd.f32 %v1663_v56, %v1321_v19  ;;  %v4188_v4 = vld [vmem:[#allocation41_spill] sm:$0xff] }
 0x24a   :  { %v1328_v61 = vpop.f32.mrf.mxu0  ;;  %v1690_v16 = vpop.f32.mrf.mxu1 }
 0x24b   :  { %4185 = vst [vmem:[#allocation29_spill] sm:$0xff] %v3835_v1  ;;  %v1329_v6 = vadd.f32 %v1328_v61, %v3564_v52  ;;  %v3838_v15 = vadd.f32 %v1670_v8, %v1327_v23 }
 0x24c   :  { %v1334_v21 = vpop.f32.mrf.mxu0  ;;  %v1697_v31 = vpop.f32.mrf.mxu1 }
 0x24d   :  { %v1335_v37 = vadd.f32 %v1334_v21, %v4186_v47  ;;  %v3841_v22 = vadd.f32 %v1672_v46, %v1329_v6  ;;  %v4190_v21 = vld [vmem:[#allocation42_spill] sm:$0xff] }
 0x24e   :  { %v1336_v50 = vpop.f32.mrf.mxu0  ;;  %v1699_v40 = vpop.f32.mrf.mxu1 }
 0x24f   :  { %4187 = vst [vmem:[#allocation30_spill] sm:$0xff] %v3841_v22  ;;  %v1337_v45 = vadd.f32 %v1336_v50, %v3572_v33  ;;  %v3844_v13 = vadd.f32 %v1679_v3, %v1335_v37 }
 0x250   :  { %v1342_v56 = vpop.f32.mrf.mxu0  ;;  %v1706_v19 = vpop.f32.mrf.mxu1 }
 0x251   :  { %v1343_v62 = vadd.f32 %v1342_v56, %v4188_v4  ;;  %v3847_v1 = vadd.f32 %v1681_v39, %v1337_v45  ;;  %v4192_v56 = vld [vmem:[#allocation43_spill] sm:$0xff] }
 0x252   :  { %v1344_v52 = vpop.f32.mrf.mxu0  ;;  %v1708_v8 = vpop.f32.mrf.mxu1 }
 0x253   :  { %4189 = vst [vmem:[#allocation31_spill] sm:$0xff] %v3847_v1  ;;  %v1345_v23 = vadd.f32 %v1344_v52, %v3580_v38  ;;  %v3850_v61 = vadd.f32 %v1688_v28, %v1343_v62 }
 0x254   :  { %v1350_v46 = vpop.f32.mrf.mxu0  ;;  %v1715_v6 = vpop.f32.mrf.mxu1 }
 0x255   :  { %v1351_v47 = vadd.f32 %v1350_v46, %v4190_v21  ;;  %v3853_v22 = vadd.f32 %v1690_v16, %v1345_v23  ;;  %v4194_v46 = vld [vmem:[#allocation44_spill] sm:$0xff] }
 0x256   :  { %v1352_v33 = vpop.f32.mrf.mxu0  ;;  %v1717_v3 = vpop.f32.mrf.mxu1 }
 0x257   :  { %4191 = vst [vmem:[#allocation32_spill] sm:$0xff] %v3853_v22  ;;  %v1353_v37 = vadd.f32 %v1352_v33, %v3588_v44  ;;  %v3856_v50 = vadd.f32 %v1697_v31, %v1351_v47 }
 0x258   :  { %v1358_v39 = vpop.f32.mrf.mxu0  ;;  %v1724_v45 = vpop.f32.mrf.mxu1 }
 0x259   :  { %v1359_v4 = vadd.f32 %v1358_v39, %v4192_v56  ;;  %v3859_v1 = vadd.f32 %v1699_v40, %v1353_v37  ;;  %v4197_v39 = vld [vmem:[#allocation45_spill] sm:$0xff] }
 0x25a   :  { %v1360_v38 = vpop.f32.mrf.mxu0  ;;  %v1726_v28 = vpop.f32.mrf.mxu1 }
 0x25b   :  { %4193 = vst [vmem:[#allocation33_spill] sm:$0xff] %v3859_v1  ;;  %v1361_v62 = vadd.f32 %v1360_v38, %v3596_v51  ;;  %v3862_v52 = vadd.f32 %v1706_v19, %v1359_v4 }
 0x25c   :  { %v1366_v16 = vpop.f32.mrf.mxu0  ;;  %v1733_v23 = vpop.f32.mrf.mxu1 }
 0x25d   :  { %v1367_v21 = vadd.f32 %v1366_v16, %v4194_v46  ;;  %v3865_v22 = vadd.f32 %v1708_v8, %v1361_v62  ;;  %v4200_v16 = vld [vmem:[#allocation46_spill] sm:$0xff] }
 0x25e   :  { %v1368_v44 = vpop.f32.mrf.mxu0  ;;  %v1735_v31 = vpop.f32.mrf.mxu1 }
 0x25f   :  { %4195 = vst [vmem:[#allocation34_spill] sm:$0xff] %v3865_v22  ;;  %v1369_v47 = vadd.f32 %v1368_v44, %v3604_v58  ;;  %v3868_v33 = vadd.f32 %v1715_v6, %v1367_v21  ;;  %v4202_v21 = vld [vmem:[#allocation47_spill] sm:$0xff] }
 0x260   :  { %v1374_v40 = vpop.f32.mrf.mxu0  ;;  %v1742_v37 = vpop.f32.mrf.mxu1 }
 0x261   :  { %4196 = vst [vmem:[#allocation35_spill] sm:$0xff] %v3868_v33  ;;  %v1375_v56 = vadd.f32 %v1374_v40, %v4197_v39  ;;  %v3871_v1 = vadd.f32 %v1717_v3, %v1369_v47  ;;  %v4204_v40 = vld [vmem:[#allocation48_spill] sm:$0xff] }
 0x262   :  { %v1376_v51 = vpop.f32.mrf.mxu0  ;;  %v1744_v19 = vpop.f32.mrf.mxu1 }
 0x263   :  { %4198 = vst [vmem:[#allocation36_spill] sm:$0xff] %v3871_v1  ;;  %v1377_v4 = vadd.f32 %v1376_v51, %v3612_v7  ;;  %v3874_v38 = vadd.f32 %v1724_v45, %v1375_v56  ;;  %v4206_v56 = vld [vmem:[#allocation49_spill] sm:$0xff] }
 0x264   :  { %v1382_v8 = vpop.f32.mrf.mxu0  ;;  %v1751_v62 = vpop.f32.mrf.mxu1 }
 0x265   :  { %4199 = vst [vmem:[#allocation37_spill] sm:$0xff] %v3874_v38  ;;  %v1383_v46 = vadd.f32 %v1382_v8, %v4200_v16  ;;  %v3877_v22 = vadd.f32 %v1726_v28, %v1377_v4  ;;  %v4208_v8 = vld [vmem:[#allocation22_spill] sm:$0xff] }
 0x266   :  { %v1384_v58 = vpop.f32.mrf.mxu0  ;;  %v1753_v6 = vpop.f32.mrf.mxu1 }
 0x267   :  { %4201 = vst [vmem:[#allocation38_spill] sm:$0xff] %v3877_v22  ;;  %v1385_v44 = vadd.f32 %v1384_v58, %v4202_v21  ;;  %v3880_v33 = vadd.f32 %v1733_v23, %v1383_v46  ;;  %v4210_v58 = vld [vmem:[#allocation50_spill] sm:$0xff] }
 0x268   :  { %v1390_v3 = vpop.f32.mrf.mxu0  ;;  %v1760_v47 = vpop.f32.mrf.mxu1 }
 0x269   :  { %4203 = vst [vmem:[#allocation39_spill] sm:$0xff] %v3880_v33  ;;  %v1391_v39 = vadd.f32 %v1390_v3, %v4204_v40  ;;  %v3883_v1 = vadd.f32 %v1735_v31, %v1385_v44  ;;  %v4212_v3 = vld [vmem:[#allocation24_spill] sm:$0xff] }
 0x26a   :  { %v1392_v7 = vpop.f32.mrf.mxu0  ;;  %v1762_v45 = vpop.f32.mrf.mxu1 }
 0x26b   :  { %4205 = vst [vmem:[#allocation40_spill] sm:$0xff] %v3883_v1  ;;  %v1393_v51 = vadd.f32 %v1392_v7, %v4206_v56  ;;  %v3886_v38 = vadd.f32 %v1742_v37, %v1391_v39  ;;  %v4214_v7 = vld [vmem:[#allocation51_spill] sm:$0xff] }
 0x26c   :  { %v1398_v28 = vpop.f32.mrf.mxu0  ;;  %v1769_v4 = vpop.f32.mrf.mxu1 }
 0x26d   :  { %4207 = vst [vmem:[#allocation41_spill] sm:$0xff] %v3886_v38  ;;  %v1399_v16 = vadd.f32 %v1398_v28, %v4208_v8  ;;  %v3889_v22 = vadd.f32 %v1744_v19, %v1393_v51  ;;  %v4216_v28 = vld [vmem:[#allocation26_spill] sm:$0xff] }
 0x26e   :  { %v1400_v23 = vpop.f32.mrf.mxu0  ;;  %v1771_v46 = vpop.f32.mrf.mxu1 }
 0x26f   :  { %4209 = vst [vmem:[#allocation42_spill] sm:$0xff] %v3889_v22  ;;  %v1401_v21 = vadd.f32 %v1400_v23, %v4210_v58  ;;  %v3892_v33 = vadd.f32 %v1751_v62, %v1399_v16  ;;  %v4218_v23 = vld [vmem:[#allocation52_spill] sm:$0xff] }
 0x270   :  { %v1406_v31 = vpop.f32.mrf.mxu0  ;;  %v1778_v44 = vpop.f32.mrf.mxu1 }
 0x271   :  { %4211 = vst [vmem:[#allocation43_spill] sm:$0xff] %v3892_v33  ;;  %v1407_v40 = vadd.f32 %v1406_v31, %v4212_v3  ;;  %v3895_v1 = vadd.f32 %v1753_v6, %v1401_v21  ;;  %v4220_v31 = vld [vmem:[#allocation23_spill] sm:$0xff] }
 0x272   :  { %v1408_v37 = vpop.f32.mrf.mxu0  ;;  %v1780_v39 = vpop.f32.mrf.mxu1 }
 0x273   :  { %4213 = vst [vmem:[#allocation44_spill] sm:$0xff] %v3895_v1  ;;  %v1409_v56 = vadd.f32 %v1408_v37, %v4214_v7  ;;  %v3898_v38 = vadd.f32 %v1760_v47, %v1407_v40  ;;  %v4221_v37 = vld [vmem:[#allocation53_spill] sm:$0xff] }
 0x274   :  { %v1414_v19 = vpop.f32.mrf.mxu0  ;;  %v1787_v51 = vpop.f32.mrf.mxu1 }
 0x275   :  { %4215 = vst [vmem:[#allocation45_spill] sm:$0xff] %v3898_v38  ;;  %v1415_v8 = vadd.f32 %v1414_v19, %v4216_v28  ;;  %v3901_v22 = vadd.f32 %v1762_v45, %v1409_v56  ;;  %v4222_v19 = vld [vmem:[#allocation25_spill] sm:$0xff] }
 0x276   :  { %v1416_v62 = vpop.f32.mrf.mxu0  ;;  %v1789_v16 = vpop.f32.mrf.mxu1 }
 0x277   :  { %4217 = vst [vmem:[#allocation46_spill] sm:$0xff] %v3901_v22  ;;  %v1417_v58 = vadd.f32 %v1416_v62, %v4218_v23  ;;  %v3904_v33 = vadd.f32 %v1769_v4, %v1415_v8  ;;  %v4224_v62 = vld [vmem:[#allocation54_spill] sm:$0xff] }
 0x278   :  { %v1422_v6 = vpop.f32.mrf.mxu0  ;;  %v2164_v21 = vpop.f32.mrf.mxu1 }
 0x279   :  { %4219 = vst [vmem:[#allocation47_spill] sm:$0xff] %v3904_v33  ;;  %v1423_v3 = vadd.f32 %v1422_v6, %v4220_v31  ;;  %v3907_v1 = vadd.f32 %v1771_v46, %v1417_v58 }
 0x27a   :  { %v1424_v47 = vpop.f32.mrf.mxu0  ;;  %v2166_v40 = vpop.f32.mrf.mxu1 }
 0x27b   :  { %v1425_v7 = vadd.f32 %v1424_v47, %v4221_v37  ;;  %v3910_v38 = vadd.f32 %v1778_v44, %v1423_v3 }
 0x27c   :  { %v1430_v45 = vpop.f32.mrf.mxu0  ;;  %v2171_v56 = vpop.f32.mrf.mxu1 }
 0x27d   :  { %v1431_v28 = vadd.f32 %v1430_v45, %v4222_v19  ;;  %v3913_v22 = vadd.f32 %v1780_v39, %v1425_v7 }
 0x27e   :  { %v1432_v4 = vpop.f32.mrf.mxu0  ;;  %v2173_v8 = vpop.f32.mrf.mxu1 }
 0x27f   :  { %4223 = vst [vmem:[#allocation48_spill] sm:$0xff] %v3913_v22  ;;  %v1433_v23 = vadd.f32 %v1432_v4, %v4224_v62  ;;  %v3916_v33 = vadd.f32 %v1787_v51, %v1431_v28 }
 0x280   :  { %v1871_v46 = vpop.f32.mrf.mxu0  ;;  %v2178_v58 = vpop.f32.mrf.mxu1 }
 0x281   :  { %v1872_v6 = vadd.f32 %v1871_v46, %v3676_v41  ;;  %v3919_v31 = vadd.f32 %v1789_v16, %v1433_v23 }
 0x282   :  { %v1873_v44 = vpop.f32.mrf.mxu0  ;;  %v2180_v3 = vpop.f32.mrf.mxu1 }
 0x283   :  { %v2165_v47 = vadd.f32 %v2164_v21, %v1872_v6  ;;  %v1874_v37 = vadd.f32 %v1873_v44, %v3683_v5 }
 0x284   :  { %v1878_v45 = vpop.f32.mrf.mxu0  ;;  %v2185_v39 = vpop.f32.mrf.mxu1 }
 0x285   :  { %v2167_v7 = vadd.f32 %v2166_v40, %v1874_v37  ;;  %v1879_v19 = vadd.f32 %v1878_v45, %v3686_v27  ;;  %2450 = vst [vmem:[#allocation10] sm:$0xff] %v2165_v47 }
 0x286   :  { %v1880_v22 = vpop.f32.mrf.mxu0  ;;  %v2187_v4 = vpop.f32.mrf.mxu1 }
 0x287   :  { %v2172_v51 = vadd.f32 %v2171_v56, %v1879_v19  ;;  %v1881_v28 = vadd.f32 %v1880_v22, %v3693_v36  ;;  %2451 = vst [vmem:[#allocation10 + $0x8] sm:$0xff] %v2167_v7 }
 0x288   :  { %v1885_v62 = vpop.f32.mrf.mxu0  ;;  %v2192_v41 = vpop.f32.mrf.mxu1 }
 0x289   :  { %v2174_v16 = vadd.f32 %v2173_v8, %v1881_v28  ;;  %v1886_v23 = vadd.f32 %v1885_v62, %v3696_v26  ;;  %2452 = vst [vmem:[#allocation10 + $0x10] sm:$0xff] %v2172_v51 }
 0x28a   :  { %v1887_v21 = vpop.f32.mrf.mxu0  ;;  %v2194_v46 = vpop.f32.mrf.mxu1 }
 0x28b   :  { %v2179_v5 = vadd.f32 %v2178_v58, %v1886_v23  ;;  %v1888_v40 = vadd.f32 %v1887_v21, %v3703_v11  ;;  %2453 = vst [vmem:[#allocation10 + $0x18] sm:$0xff] %v2174_v16 }
 0x28c   :  { %v1892_v6 = vpop.f32.mrf.mxu0  ;;  %v2199_v27 = vpop.f32.mrf.mxu1 }
 0x28d   :  { %v2181_v44 = vadd.f32 %v2180_v3, %v1888_v40  ;;  %v1893_v56 = vadd.f32 %v1892_v6, %v3706_v53  ;;  %2454 = vst [vmem:[#allocation10 + $0x20] sm:$0xff] %v2179_v5 }
 0x28e   :  { %v1894_v47 = vpop.f32.mrf.mxu0  ;;  %v2201_v36 = vpop.f32.mrf.mxu1 }
 0x28f   :  { %v2186_v22 = vadd.f32 %v2185_v39, %v1893_v56  ;;  %v1895_v8 = vadd.f32 %v1894_v47, %v3713_v29  ;;  %2455 = vst [vmem:[#allocation10 + $0x28] sm:$0xff] %v2181_v44 }
 0x290   :  { %v1899_v37 = vpop.f32.mrf.mxu0  ;;  %v2206_v26 = vpop.f32.mrf.mxu1 }
 0x291   :  { %v2188_v45 = vadd.f32 %v2187_v4, %v1895_v8  ;;  %v1900_v58 = vadd.f32 %v1899_v37, %v3716_v25  ;;  %2456 = vst [vmem:[#allocation10 + $0x30] sm:$0xff] %v2186_v22 }
 0x292   :  { %v1901_v7 = vpop.f32.mrf.mxu0  ;;  %v2208_v11 = vpop.f32.mrf.mxu1 }
 0x293   :  { %v2193_v19 = vadd.f32 %v2192_v41, %v1900_v58  ;;  %v1902_v3 = vadd.f32 %v1901_v7, %v3723_v48  ;;  %2457 = vst [vmem:[#allocation10 + $0x38] sm:$0xff] %v2188_v45 }
 0x294   :  { %v1906_v51 = vpop.f32.mrf.mxu0  ;;  %v2213_v53 = vpop.f32.mrf.mxu1 }
 0x295   :  { %v2195_v28 = vadd.f32 %v2194_v46, %v1902_v3  ;;  %v1907_v39 = vadd.f32 %v1906_v51, %v3726_v35  ;;  %2458 = vst [vmem:[#allocation10 + $0x40] sm:$0xff] %v2193_v19 }
 0x296   :  { %v1908_v62 = vpop.f32.mrf.mxu0  ;;  %v2215_v29 = vpop.f32.mrf.mxu1 }
 0x297   :  { %v2200_v16 = vadd.f32 %v2199_v27, %v1907_v39  ;;  %v1909_v4 = vadd.f32 %v1908_v62, %v3733_v49  ;;  %2459 = vst [vmem:[#allocation10 + $0x48] sm:$0xff] %v2195_v28 }
 0x298   :  { %v1913_v23 = vpop.f32.mrf.mxu0  ;;  %v2220_v25 = vpop.f32.mrf.mxu1 }
 0x299   :  { %v2202_v21 = vadd.f32 %v2201_v36, %v1909_v4  ;;  %v1914_v41 = vadd.f32 %v1913_v23, %v3736_v55  ;;  %2460 = vst [vmem:[#allocation10 + $0x50] sm:$0xff] %v2200_v16 }
 0x29a   :  { %v1915_v5 = vpop.f32.mrf.mxu0  ;;  %v2222_v48 = vpop.f32.mrf.mxu1 }
 0x29b   :  { %v2207_v40 = vadd.f32 %v2206_v26, %v1914_v41  ;;  %v1916_v46 = vadd.f32 %v1915_v5, %v3743_v34  ;;  %2461 = vst [vmem:[#allocation10 + $0x58] sm:$0xff] %v2202_v21 }
 0x29c   :  { %v1920_v6 = vpop.f32.mrf.mxu0  ;;  %v2227_v35 = vpop.f32.mrf.mxu1 }
 0x29d   :  { %v2209_v44 = vadd.f32 %v2208_v11, %v1916_v46  ;;  %v1921_v27 = vadd.f32 %v1920_v6, %v3746_v17  ;;  %2462 = vst [vmem:[#allocation10 + $0x60] sm:$0xff] %v2207_v40 }
 0x29e   :  { %v1922_v56 = vpop.f32.mrf.mxu0  ;;  %v2229_v49 = vpop.f32.mrf.mxu1 }
 0x29f   :  { %v2214_v47 = vadd.f32 %v2213_v53, %v1921_v27  ;;  %v1923_v36 = vadd.f32 %v1922_v56, %v3753_v54  ;;  %2463 = vst [vmem:[#allocation10 + $0x68] sm:$0xff] %v2209_v44 }
 0x2a0   :  { %v1927_v22 = vpop.f32.mrf.mxu0  ;;  %v2234_v55 = vpop.f32.mrf.mxu1 }
 0x2a1   :  { %v2216_v8 = vadd.f32 %v2215_v29, %v1923_v36  ;;  %v1928_v37 = vadd.f32 %v1927_v22, %v3756_v30  ;;  %2464 = vst [vmem:[#allocation10 + $0x70] sm:$0xff] %v2214_v47 }
 0x2a2   :  { %v1929_v26 = vpop.f32.mrf.mxu0  ;;  %v2236_v34 = vpop.f32.mrf.mxu1 }
 0x2a3   :  { %v2221_v45 = vadd.f32 %v2220_v25, %v1928_v37  ;;  %v1930_v58 = vadd.f32 %v1929_v26, %v3763_v57  ;;  %2465 = vst [vmem:[#allocation10 + $0x78] sm:$0xff] %v2216_v8 }
 0x2a4   :  { %v1934_v7 = vpop.f32.mrf.mxu0  ;;  %v2241_v17 = vpop.f32.mrf.mxu1 }
 0x2a5   :  { %v2223_v11 = vadd.f32 %v2222_v48, %v1930_v58  ;;  %v1935_v19 = vadd.f32 %v1934_v7, %v3766_v18  ;;  %2466 = vst [vmem:[#allocation10 + $0x80] sm:$0xff] %v2221_v45 }
 0x2a6   :  { %v1936_v3 = vpop.f32.mrf.mxu0  ;;  %v2243_v54 = vpop.f32.mrf.mxu1 }
 0x2a7   :  { %v2228_v51 = vadd.f32 %v2227_v35, %v1935_v19  ;;  %v1937_v53 = vadd.f32 %v1936_v3, %v3773_v20  ;;  %2467 = vst [vmem:[#allocation10 + $0x88] sm:$0xff] %v2223_v11 }
 0x2a8   :  { %v1941_v28 = vpop.f32.mrf.mxu0  ;;  %v2248_v30 = vpop.f32.mrf.mxu1 }
 0x2a9   :  { %v2230_v39 = vadd.f32 %v2229_v49, %v1937_v53  ;;  %v1942_v62 = vadd.f32 %v1941_v28, %v3776_v12  ;;  %2468 = vst [vmem:[#allocation10 + $0x90] sm:$0xff] %v2228_v51 }
 0x2aa   :  { %v1943_v29 = vpop.f32.mrf.mxu0  ;;  %v2250_v57 = vpop.f32.mrf.mxu1 }
 0x2ab   :  { %v2235_v16 = vadd.f32 %v2234_v55, %v1942_v62  ;;  %v1944_v4 = vadd.f32 %v1943_v29, %v3783_v43  ;;  %2469 = vst [vmem:[#allocation10 + $0x98] sm:$0xff] %v2230_v39  ;;  %v4226_v29 = vld [vmem:[#allocation28_spill] sm:$0xff] }
 0x2ac   :  { %v1948_v23 = vpop.f32.mrf.mxu0  ;;  %v2255_v18 = vpop.f32.mrf.mxu1 }
 0x2ad   :  { %v2237_v25 = vadd.f32 %v2236_v34, %v1944_v4  ;;  %v1949_v21 = vadd.f32 %v1948_v23, %v3786_v63  ;;  %2470 = vst [vmem:[#allocation10 + $0xa0] sm:$0xff] %v2235_v16 }
 0x2ae   :  { %v1950_v41 = vpop.f32.mrf.mxu0  ;;  %v2257_v20 = vpop.f32.mrf.mxu1 }
 0x2af   :  { %v2242_v5 = vadd.f32 %v2241_v17, %v1949_v21  ;;  %v1951_v48 = vadd.f32 %v1950_v41, %v3793_v2  ;;  %2471 = vst [vmem:[#allocation10 + $0xa8] sm:$0xff] %v2237_v25  ;;  %v4227_v41 = vld [vmem:[#allocation29_spill] sm:$0xff] }
 0x2b0   :  { %v1955_v40 = vpop.f32.mrf.mxu0  ;;  %v2262_v12 = vpop.f32.mrf.mxu1 }
 0x2b1   :  { %v2244_v46 = vadd.f32 %v2243_v54, %v1951_v48  ;;  %v1956_v6 = vadd.f32 %v1955_v40, %v3796_v59  ;;  %2472 = vst [vmem:[#allocation10 + $0xb0] sm:$0xff] %v2242_v5  ;;  %v4225_v54 = vld [vmem:[#allocation27_spill] sm:$0xff] }
 0x2b2   :  { %v1957_v35 = vpop.f32.mrf.mxu0  ;;  %v2264_v43 = vpop.f32.mrf.mxu1 }
 0x2b3   :  { %v2249_v44 = vadd.f32 %v2248_v30, %v1956_v6  ;;  %v1958_v27 = vadd.f32 %v1957_v35, %v3802_v24  ;;  %2473 = vst [vmem:[#allocation10 + $0xb8] sm:$0xff] %v2244_v46  ;;  %v4228_v35 = vld [vmem:[#allocation30_spill] sm:$0xff] }
 0x2b4   :  { %v1962_v56 = vpop.f32.mrf.mxu0  ;;  %v2269_v63 = vpop.f32.mrf.mxu1 }
 0x2b5   :  { %v2251_v49 = vadd.f32 %v2250_v57, %v1958_v27  ;;  %v1963_v47 = vadd.f32 %v1962_v56, %v3805_v14  ;;  %2474 = vst [vmem:[#allocation10 + $0xc0] sm:$0xff] %v2249_v44 }
 0x2b6   :  { %v1964_v36 = vpop.f32.mrf.mxu0  ;;  %v2271_v2 = vpop.f32.mrf.mxu1 }
 0x2b7   :  { %v2256_v22 = vadd.f32 %v2255_v18, %v1963_v47  ;;  %v1965_v55 = vadd.f32 %v1964_v36, %v3810_v9  ;;  %2475 = vst [vmem:[#allocation10 + $0xc8] sm:$0xff] %v2251_v49  ;;  %v4229_v36 = vld [vmem:[#allocation31_spill] sm:$0xff] }
 0x2b8   :  { %v1969_v8 = vpop.f32.mrf.mxu0  ;;  %v2276_v59 = vpop.f32.mrf.mxu1 }
 0x2b9   :  { %v2258_v37 = vadd.f32 %v2257_v20, %v1965_v55  ;;  %v1970_v26 = vadd.f32 %v1969_v8, %v3813_v32  ;;  %2476 = vst [vmem:[#allocation10 + $0xd0] sm:$0xff] %v2256_v22 }
 0x2ba   :  { %v1971_v34 = vpop.f32.mrf.mxu0  ;;  %v2278_v24 = vpop.f32.mrf.mxu1 }
 0x2bb   :  { %v2263_v45 = vadd.f32 %v2262_v12, %v1970_v26  ;;  %v1972_v58 = vadd.f32 %v1971_v34, %v3817_v10  ;;  %2477 = vst [vmem:[#allocation10 + $0xd8] sm:$0xff] %v2258_v37  ;;  %v4230_v34 = vld [vmem:[#allocation32_spill] sm:$0xff] }
 0x2bc   :  { %v1976_v7 = vpop.f32.mrf.mxu0  ;;  %v2283_v14 = vpop.f32.mrf.mxu1 }
 0x2bd   :  { %v2265_v17 = vadd.f32 %v2264_v43, %v1972_v58  ;;  %v1977_v11 = vadd.f32 %v1976_v7, %v3820_v60  ;;  %2478 = vst [vmem:[#allocation10 + $0xe0] sm:$0xff] %v2263_v45 }
 0x2be   :  { %v1978_v19 = vpop.f32.mrf.mxu0  ;;  %v2285_v9 = vpop.f32.mrf.mxu1 }
 0x2bf   :  { %v2270_v3 = vadd.f32 %v2269_v63, %v1977_v11  ;;  %v1979_v51 = vadd.f32 %v1978_v19, %v4225_v54  ;;  %2479 = vst [vmem:[#allocation10 + $0xe8] sm:$0xff] %v2265_v17  ;;  %v4231_v19 = vld [vmem:[#allocation33_spill] sm:$0xff] }
 0x2c0   :  { %v1983_v53 = vpop.f32.mrf.mxu0  ;;  %v2290_v32 = vpop.f32.mrf.mxu1 }
 0x2c1   :  { %v2272_v28 = vadd.f32 %v2271_v2, %v1979_v51  ;;  %v1984_v30 = vadd.f32 %v1983_v53, %v3826_v0  ;;  %2480 = vst [vmem:[#allocation10 + $0xf0] sm:$0xff] %v2270_v3 }
 0x2c2   :  { %v1985_v39 = vpop.f32.mrf.mxu0  ;;  %v2292_v10 = vpop.f32.mrf.mxu1 }
 0x2c3   :  { %v2277_v62 = vadd.f32 %v2276_v59, %v1984_v30  ;;  %v1986_v57 = vadd.f32 %v1985_v39, %v4226_v29  ;;  %2481 = vst [vmem:[#allocation10 + $0xf8] sm:$0xff] %v2272_v28  ;;  %v4232_v30 = vld [vmem:[#allocation34_spill] sm:$0xff]  ;;  %v4233_v29 = vld [vmem:[#allocation35_spill] sm:$0xff] }
 0x2c4   :  { %v1990_v16 = vpop.f32.mrf.mxu0  ;;  %v2297_v60 = vpop.f32.mrf.mxu1 }
 0x2c5   :  { %v2279_v4 = vadd.f32 %v2278_v24, %v1986_v57  ;;  %v1991_v23 = vadd.f32 %v1990_v16, %v3832_v42  ;;  %2482 = vst [vmem:[#allocation10 + $0x100] sm:$0xff] %v2277_v62 }
 0x2c6   :  { %v1992_v18 = vpop.f32.mrf.mxu0  ;;  %v2299_v25 = vpop.f32.mrf.mxu1 }
 0x2c7   :  { %v2284_v21 = vadd.f32 %v2283_v14, %v1991_v23  ;;  %v1993_v20 = vadd.f32 %v1992_v18, %v4227_v41  ;;  %2483 = vst [vmem:[#allocation10 + $0x108] sm:$0xff] %v2279_v4  ;;  %v4234_v23 = vld [vmem:[#allocation36_spill] sm:$0xff]  ;;  %v4235_v41 = vld [vmem:[#allocation37_spill] sm:$0xff] }
 0x2c8   :  { %v1997_v5 = vpop.f32.mrf.mxu0  ;;  %v2304_v0 = vpop.f32.mrf.mxu1 }
 0x2c9   :  { %v2286_v48 = vadd.f32 %v2285_v9, %v1993_v20  ;;  %v1998_v40 = vadd.f32 %v1997_v5, %v3838_v15  ;;  %2484 = vst [vmem:[#allocation10 + $0x110] sm:$0xff] %v2284_v21 }
 0x2ca   :  { %v1999_v12 = vpop.f32.mrf.mxu0  ;;  %v2306_v46 = vpop.f32.mrf.mxu1 }
 0x2cb   :  { %v2291_v6 = vadd.f32 %v2290_v32, %v1998_v40  ;;  %v2000_v43 = vadd.f32 %v1999_v12, %v4228_v35  ;;  %2485 = vst [vmem:[#allocation10 + $0x118] sm:$0xff] %v2286_v48  ;;  %v4236_v40 = vld [vmem:[#allocation38_spill] sm:$0xff] }
 0x2cc   :  { %v2004_v44 = vpop.f32.mrf.mxu0  ;;  %v2311_v42 = vpop.f32.mrf.mxu1 }
 0x2cd   :  { %v2293_v27 = vadd.f32 %v2292_v10, %v2000_v43  ;;  %v2005_v56 = vadd.f32 %v2004_v44, %v3844_v13  ;;  %2486 = vst [vmem:[#allocation10 + $0x120] sm:$0xff] %v2291_v6  ;;  %v4237_v43 = vld [vmem:[#allocation39_spill] sm:$0xff] }
 0x2ce   :  { %v2006_v63 = vpop.f32.mrf.mxu0  ;;  %v2313_v49 = vpop.f32.mrf.mxu1 }
 0x2cf   :  { %v2298_v47 = vadd.f32 %v2297_v60, %v2005_v56  ;;  %v2007_v2 = vadd.f32 %v2006_v63, %v4229_v36  ;;  %2487 = vst [vmem:[#allocation10 + $0x128] sm:$0xff] %v2293_v27  ;;  %v4238_v63 = vld [vmem:[#allocation40_spill] sm:$0xff] }
 0x2d0   :  { %v2011_v22 = vpop.f32.mrf.mxu0  ;;  %v2318_v15 = vpop.f32.mrf.mxu1 }
 0x2d1   :  { %v2300_v55 = vadd.f32 %v2299_v25, %v2007_v2  ;;  %v2012_v8 = vadd.f32 %v2011_v22, %v3850_v61  ;;  %2488 = vst [vmem:[#allocation10 + $0x130] sm:$0xff] %v2298_v47  ;;  %v4239_v22 = vld [vmem:[#allocation41_spill] sm:$0xff] }
 0x2d2   :  { %v2013_v59 = vpop.f32.mrf.mxu0  ;;  %v2320_v37 = vpop.f32.mrf.mxu1 }
 0x2d3   :  { %v2305_v26 = vadd.f32 %v2304_v0, %v2012_v8  ;;  %v2014_v24 = vadd.f32 %v2013_v59, %v4230_v34  ;;  %2489 = vst [vmem:[#allocation10 + $0x138] sm:$0xff] %v2300_v55 }
 0x2d4   :  { %v2018_v45 = vpop.f32.mrf.mxu0  ;;  %v2325_v13 = vpop.f32.mrf.mxu1 }
 0x2d5   :  { %v2307_v58 = vadd.f32 %v2306_v46, %v2014_v24  ;;  %v2019_v7 = vadd.f32 %v2018_v45, %v3856_v50  ;;  %2490 = vst [vmem:[#allocation10 + $0x140] sm:$0xff] %v2305_v26 }
 0x2d6   :  { %v2020_v14 = vpop.f32.mrf.mxu0  ;;  %v2327_v17 = vpop.f32.mrf.mxu1 }
 0x2d7   :  { %v2312_v11 = vadd.f32 %v2311_v42, %v2019_v7  ;;  %v2021_v9 = vadd.f32 %v2020_v14, %v4231_v19  ;;  %2491 = vst [vmem:[#allocation10 + $0x148] sm:$0xff] %v2307_v58 }
 0x2d8   :  { %v2025_v3 = vpop.f32.mrf.mxu0  ;;  %v2332_v61 = vpop.f32.mrf.mxu1 }
 0x2d9   :  { %v2314_v54 = vadd.f32 %v2313_v49, %v2021_v9  ;;  %v2026_v51 = vadd.f32 %v2025_v3, %v3862_v52  ;;  %2492 = vst [vmem:[#allocation10 + $0x150] sm:$0xff] %v2312_v11 }
 0x2da   :  { %v2027_v53 = vpop.f32.mrf.mxu0  ;;  %v2334_v32 = vpop.f32.mrf.mxu1 }
 0x2db   :  { %v2319_v28 = vadd.f32 %v2318_v15, %v2026_v51  ;;  %v2028_v39 = vadd.f32 %v2027_v53, %v4232_v30  ;;  %2493 = vst [vmem:[#allocation10 + $0x158] sm:$0xff] %v2314_v54 }
 0x2dc   :  { %v2032_v10 = vpop.f32.mrf.mxu0  ;;  %v2339_v50 = vpop.f32.mrf.mxu1 }
 0x2dd   :  { %v2321_v62 = vadd.f32 %v2320_v37, %v2028_v39  ;;  %v2033_v57 = vadd.f32 %v2032_v10, %v4233_v29  ;;  %2494 = vst [vmem:[#allocation10 + $0x160] sm:$0xff] %v2319_v28  ;;  %v4240_v37 = vld [vmem:[#allocation42_spill] sm:$0xff] }
 0x2de   :  { %v2034_v16 = vpop.f32.mrf.mxu0  ;;  %v2341_v60 = vpop.f32.mrf.mxu1 }
 0x2df   :  { %v2326_v4 = vadd.f32 %v2325_v13, %v2033_v57  ;;  %v2035_v18 = vadd.f32 %v2034_v16, %v4234_v23  ;;  %2495 = vst [vmem:[#allocation10 + $0x168] sm:$0xff] %v2321_v62  ;;  %v4241_v13 = vld [vmem:[#allocation43_spill] sm:$0xff] }
 0x2e0   :  { %v2039_v25 = vpop.f32.mrf.mxu0  ;;  %v2346_v52 = vpop.f32.mrf.mxu1 }
 0x2e1   :  { %v2328_v21 = vadd.f32 %v2327_v17, %v2035_v18  ;;  %v2040_v20 = vadd.f32 %v2039_v25, %v4235_v41  ;;  %2496 = vst [vmem:[#allocation10 + $0x170] sm:$0xff] %v2326_v4  ;;  %v4242_v17 = vld [vmem:[#allocation44_spill] sm:$0xff] }
 0x2e2   :  { %v2041_v5 = vpop.f32.mrf.mxu0  ;;  %v2348_v0 = vpop.f32.mrf.mxu1 }
 0x2e3   :  { %v2333_v48 = vadd.f32 %v2332_v61, %v2040_v20  ;;  %v2042_v12 = vadd.f32 %v2041_v5, %v4236_v40  ;;  %2497 = vst [vmem:[#allocation10 + $0x178] sm:$0xff] %v2328_v21  ;;  %v4243_v61 = vld [vmem:[#allocation45_spill] sm:$0xff]  ;;  %v4246_v21 = vld [vmem:[#allocation48_spill] sm:$0xff] }
 0x2e4   :  { %v2046_v46 = vpop.f32.mrf.mxu0  ;;  %v2353_v6 = vpop.f32.mrf.mxu1 }
 0x2e5   :  { %v2335_v35 = vadd.f32 %v2334_v32, %v2042_v12  ;;  %v2047_v44 = vadd.f32 %v2046_v46, %v4237_v43  ;;  %2498 = vst [vmem:[#allocation10 + $0x180] sm:$0xff] %v2333_v48  ;;  %v4244_v32 = vld [vmem:[#allocation46_spill] sm:$0xff] }
 0x2e6   :  { %v2048_v42 = vpop.f32.mrf.mxu0  ;;  %v2355_v27 = vpop.f32.mrf.mxu1 }
 0x2e7   :  { %v2340_v56 = vadd.f32 %v2339_v50, %v2047_v44  ;;  %v2049_v49 = vadd.f32 %v2048_v42, %v4238_v63  ;;  %2499 = vst [vmem:[#allocation10 + $0x188] sm:$0xff] %v2335_v35  ;;  %v4245_v50 = vld [vmem:[#allocation47_spill] sm:$0xff] }
 0x2e8   :  { %v2053_v47 = vpop.f32.mrf.mxu0  ;;  %v2360_v36 = vpop.f32.mrf.mxu1 }
 0x2e9   :  { %v2342_v2 = vadd.f32 %v2341_v60, %v2049_v49  ;;  %v2054_v15 = vadd.f32 %v2053_v47, %v4239_v22  ;;  %2500 = vst [vmem:[#allocation10 + $0x190] sm:$0xff] %v2340_v56 }
 0x2ea   :  { %v2055_v55 = vpop.f32.mrf.mxu0  ;;  %v2362_v8 = vpop.f32.mrf.mxu1 }
 0x2eb   :  { %v2347_v59 = vadd.f32 %v2346_v52, %v2054_v15  ;;  %v2056_v26 = vadd.f32 %v2055_v55, %v4240_v37  ;;  %2501 = vst [vmem:[#allocation10 + $0x198] sm:$0xff] %v2342_v2 }
 0x2ec   :  { %v2060_v34 = vpop.f32.mrf.mxu0  ;;  %v2367_v24 = vpop.f32.mrf.mxu1 }
 0x2ed   :  { %v2349_v45 = vadd.f32 %v2348_v0, %v2056_v26  ;;  %v2061_v58 = vadd.f32 %v2060_v34, %v4241_v13  ;;  %2502 = vst [vmem:[#allocation10 + $0x1a0] sm:$0xff] %v2347_v59 }
 0x2ee   :  { %v2062_v7 = vpop.f32.mrf.mxu0  ;;  %v2369_v19 = vpop.f32.mrf.mxu1 }
 0x2ef   :  { %v2354_v14 = vadd.f32 %v2353_v6, %v2061_v58  ;;  %v2063_v11 = vadd.f32 %v2062_v7, %v4242_v17  ;;  %2503 = vst [vmem:[#allocation10 + $0x1a8] sm:$0xff] %v2349_v45 }
 0x2f0   :  { %v2067_v9 = vpop.f32.mrf.mxu0  ;;  %v2374_v30 = vpop.f32.mrf.mxu1 }
 0x2f1   :  { %v2356_v3 = vadd.f32 %v2355_v27, %v2063_v11  ;;  %v2068_v54 = vadd.f32 %v2067_v9, %v4243_v61  ;;  %2504 = vst [vmem:[#allocation10 + $0x1b0] sm:$0xff] %v2354_v14 }
 0x2f2   :  { %v2069_v51 = vpop.f32.mrf.mxu0  ;;  %v2376_v60 = vpop.f32.mrf.mxu1 }
 0x2f3   :  { %v2361_v53 = vadd.f32 %v2360_v36, %v2068_v54  ;;  %v2070_v28 = vadd.f32 %v2069_v51, %v4244_v32  ;;  %2505 = vst [vmem:[#allocation10 + $0x1b8] sm:$0xff] %v2356_v3 }
 0x2f4   :  { %v2074_v39 = vpop.f32.mrf.mxu0  ;;  %v2381_v20 = vpop.f32.mrf.mxu1 }
 0x2f5   :  { %v2363_v10 = vadd.f32 %v2362_v8, %v2070_v28  ;;  %v2075_v62 = vadd.f32 %v2074_v39, %v4245_v50  ;;  %2506 = vst [vmem:[#allocation10 + $0x1c0] sm:$0xff] %v2361_v53 }
 0x2f6   :  { %v2076_v29 = vpop.f32.mrf.mxu0  ;;  %v2383_v46 = vpop.f32.mrf.mxu1 }
 0x2f7   :  { %v2368_v57 = vadd.f32 %v2367_v24, %v2075_v62  ;;  %v2077_v16 = vadd.f32 %v2076_v29, %v3907_v1  ;;  %2507 = vst [vmem:[#allocation10 + $0x1c8] sm:$0xff] %v2363_v10 }
 0x2f8   :  { %v2081_v4 = vpop.f32.mrf.mxu0 }
 0x2f9   :  { %v2370_v23 = vadd.f32 %v2369_v19, %v2077_v16  ;;  %v2082_v18 = vadd.f32 %v2081_v4, %v3910_v38  ;;  %2508 = vst [vmem:[#allocation10 + $0x1d0] sm:$0xff] %v2368_v57 }
 0x2fa   :  { %v2083_v25 = vpop.f32.mrf.mxu0 }
 0x2fb   :  { %v2375_v52 = vadd.f32 %v2374_v30, %v2082_v18  ;;  %v2084_v41 = vadd.f32 %v2083_v25, %v4246_v21  ;;  %2509 = vst [vmem:[#allocation10 + $0x1d8] sm:$0xff] %v2370_v23 }
 0x2fc   :  { %v2088_v5 = vpop.f32.mrf.mxu0 }
 0x2fd   :  { %v2377_v0 = vadd.f32 %v2376_v60, %v2084_v41  ;;  %v2089_v48 = vadd.f32 %v2088_v5, %v3916_v33  ;;  %2510 = vst [vmem:[#allocation10 + $0x1e0] sm:$0xff] %v2375_v52 }
 0x2fe   :  { %v2090_v40 = vpop.f32.mrf.mxu0 }
 0x2ff   :  { %v2382_v1 = vadd.f32 %v2381_v20, %v2089_v48  ;;  %v2091_v12 = vadd.f32 %v2090_v40, %v3919_v31  ;;  %2511 = vst [vmem:[#allocation10 + $0x1e8] sm:$0xff] %v2377_v0  ;;  %2517 = sbr.rel (%p2614_p6) target bundleno = 797 (0x31d), region = 29 }
 0x301   :  { %v2384_v6 = vadd.f32 %v2383_v46, %v2091_v12  ;;  %2512 = vst [vmem:[#allocation10 + $0x1f0] sm:$0xff] %v2382_v1 }
 0x303   :  { %2513 = vst [vmem:[#allocation10 + $0x1f8] sm:$0xff] %v2384_v6 }
 0x304   :  { %v4247_v38 = vld [vmem:[#allocation18_spill] sm:$0xff]  ;;  %v4248_v35 = vld [vmem:[#allocation20_spill] sm:$0xff]  ;;  %v4249_v44 = vld [vmem:[#allocation19_spill] sm:$0xff]  ;;  %v2730_v49 = vmov 1966171168   ;;  %v4251_v8 = vlaneseq }
 0x305   :  { %v2521_v43 = vadd.f32 %v4248_v35, %v4247_v38  ;;  %v4250_v42 = vld [vmem:[#allocation21_spill] sm:$0xff]  ;;  %v2539_v47 = vunpack.c.l.s4 %v2730_v49  ;;  %v2520_v7 = vld [vmem:[%s2519_s26] sm:$0x3] }
 0x306   :  { %v2528_v33 = vadd.f32 %v4250_v42, %v4249_v44  ;;  %v2542_v59 = vshrl.u32 %v4251_v8, 7 }
 0x307   :  { %v2522_v27 = vrot.slane %v2521_v43, 4  ;;  %v2540_v55 = vunpack.c.0.s8 %v2539_v47 }
 0x308   :  { %v2529_v56 = vrot.slane %v2528_v33, 4 }
 0x309   :  { %v2523_v63 = vadd.f32 %v2522_v27, %v2521_v43  ;;  %v2543_v45 = vsub.s32 %v2540_v55, %v2542_v59 }
 0x30a   :  { %v2530_v31 = vadd.f32 %v2529_v56, %v2528_v33 }
 0x30b   :  { %v2524_v36 = vrot.slane %v2523_v63, 2 }
 0x30c   :  { %v2531_v2 = vrot.slane %v2530_v31, 2 }
 0x30d   :  { %v2525_v22 = vadd.f32 %v2524_v36, %v2523_v63 }
 0x30e   :  { %v2532_v15 = vadd.f32 %v2531_v2, %v2530_v31 }
 0x30f   :  { %v2526_v37 = vrot.slane %v2525_v22, 1 }
 0x310   :  { %v2533_v26 = vrot.slane %v2532_v15, 1 }
 0x311   :  { %v2527_v34 = vadd.f32 %v2526_v37, %v2525_v22 }
 0x312   :  { %v2534_v24 = vadd.f32 %v2533_v26, %v2532_v15 }
 0x314   :  { %v2537_v13 = vcombine.low %v2527_v34, %v2534_v24 }
 0x316   :  { %v2544_v58 = vrot.slane %v2537_v13, %v2543_v45 }
 0x318   :  { %v2551_v14 = vrot.slane %v2544_v58, %v2543_v45 }
 0x31a   :  { %v2553_v17 = vadd.f32 %v2551_v14, %v2520_v7 }
 0x31c   :  { %2558 = vst.msk [vmem:[%s2519_s26] sm:$0x3] %vm2807_vm0, %v2553_v17 }
 0x31d PF:  { %s2561_s27 = sld [smem:[#allocation3]]  ;;  %s2731_s29 = smov [#allocation11]  }
 0x31e   :  { %s2562_s28 = sld [smem:[#allocation4]]  ;;  %s2585_s30 = sshll.u32 %s2731_s29, 4  ;;  %s2586_s30 = int_to_ptr.vmem [resolvable:$true] %s2585_s30 }
 0x31f   :  { %s2732_s0 = smov [#allocation10]   ;;  %s2675_s1 = scalar_lea.vmem %s2586_s30, 32 }
 0x320   :  { %s2572_s6 = sshll.u32 %s2732_s0, 4  ;;  %p2676_p7 = scmp.ne.s32.totalorder %s2586_s30, %s2675_s1  ;;  %s2573_s6 = int_to_ptr.vmem [resolvable:$true] %s2572_s6 }
 0x321   :  { %p2680_p8 = scmp.lt.s32.totalorder %s2586_s30, %s2586_s30  ;;  %p2681_p9 = scmp.lt.s32.totalorder %s2675_s1, %s2675_s1 }
 0x323   :  { %p2682_p10 = por %p2681_p9, %p2680_p8 }
 0x325   :  { %p2683_p11 = pnand %p2682_p10, %p2676_p7 }
 0x327   :  { %2686 = shalt.err (!%p2683_p11)
}
 0x328   :  { %2588 = dma.vmem_to_hbm [thread:$0]  %s2586_s30, 32, %s4014_s5, [#allocation12]  }
 0x329   :  { %s2622_s9 = sshll.u32 %s2561_s27, 6  ;;  %s2617_s10 = sshll.u32 %s2562_s28, 1 }
 0x32a   :  { %s2569_s11 = sadd.s32 %s2622_s9, %s2617_s10  ;;  %s2695_s17 = scalar_lea.vmem %s2573_s6, 8192 }
 0x32b   :  { %s2619_s14 = sshll.u32 %s2569_s11, 7  ;;  %p2696_p12 = scmp.ne.s32.totalorder %s2573_s6, %s2695_s17 }
 0x32c   :  { %s2571_s16 = scalar_lea.hbm %s4013_s4, %s2619_s14  ;;  %p2700_p13 = scmp.lt.s32.totalorder %s2573_s6, %s2573_s6 }
 0x32d   :  { %p2701_p0 = scmp.lt.s32.totalorder %s2695_s17, %s2695_s17 }
 0x32f   :  { %p2702_p1 = por %p2701_p0, %p2700_p13 }
 0x331   :  { %p2703_p2 = pnand %p2702_p1, %p2696_p12 }
 0x333   :  { %2706 = shalt.err (!%p2703_p2)
}
 0x334   :  { %s2707_s18 = scalar_lea.hbm %s2571_s16, 8192  ;;  %s2709_s20 = scalar_lea.hbm %s4013_s4, 8192 }
 0x335   :  { %p2708_p3 = scmp.ne.s32.totalorder %s2571_s16, %s2707_s18  ;;  %p2710_p4 = scmp.lt.s32.totalorder %s2571_s16, %s4013_s4 }
 0x336   :  { %p2711_p5 = scmp.lt.s32.totalorder %s2709_s20, %s2707_s18 }
 0x338   :  { %p2712_p6 = por %p2711_p5, %p2710_p4 }
 0x33a   :  { %p2713_p7 = pnand %p2712_p6, %p2708_p3 }
 0x33c   :  { %2716 = shalt.err (!%p2713_p7)
}
 0x33d   :  { %2578 = dma.vmem_to_hbm [thread:$0]  %s2573_s6, 8192, %s2571_s16, [#allocation7], %s2727_s12, %s2727_s12, %s2728_s13  }
 0x33e   :  { %2721 = dma.done.wait [#allocation7], 8192  }
 0x33f   :  { %2722 = vsyncadd [#allocation7], 4294959104 }
 0x340   :  { %2723 = dma.done.wait [#allocation12], 32  }
 0x341   :  { %2724 = vsyncadd [#allocation12], 4294967264 }
 0x342   :  { %2595 = vsyncpa [#allocation6], 1 }
 0x343   :  { %2596 = vsyncpa [#allocation9], 1 }
 0x344   :  { %2597 = vsyncpa [#allocation7], 1 }
 0x345   :  { %2598 = vsyncpa [#allocation12], 1 }

</bundles_post_ra>
